<compile_context>
chip_gen: v7x
topology: tpu7x:2x2x1
jax: 0.10.0
libtpu: 0.0.40
codegen_flags: <defaults>
</compile_context>

<pallas_src>
import functools
import numpy as np
import jax
import jax.numpy as jnp
from jax import lax
from jax.experimental import pallas as pl
from jax.experimental.pallas import tpu as pltpu


def _layernorm(x, gamma, beta, eps=1e-5):
    mean = jnp.mean(x, axis=-1, keepdims=True)
    var = jnp.mean((x - mean) ** 2, axis=-1, keepdims=True)
    return (x - mean) * lax.rsqrt(var + eps) * gamma + beta


def _fusion_kernel(n_head, rl_ref, kpe_ref, vraw_ref, qres_ref,
                   wqk_ref, bqk_ref, wv_ref, womlp_ref, bvec_ref,
                   sel_ref, selt_ref, out_ref):
    """One grid step == (Bt batch elements) x (HWt spatial rows).

    rl_ref   : (Bpad,) int32 in SMEM (scalar-prefetched record_len)
    kpe_ref  : (Bt, N, HWt, C)  PE features (query/key source), operand dtype
    vraw_ref : (Bt, N, HWt, C)  raw features (value source),    operand dtype
    qres_ref : (Bt, HWt, C)     f32 agent-0 PE features (residual path)
    wqk_ref  : (C, 2C)  [Wq^T * 1/sqrt(hd) | Wk^T]   operand dtype
    bqk_ref  : (1, 2C)  [bq * 1/sqrt(hd) | bk]       f32
    wv_ref   : (C, C)   Wv^T                          operand dtype
    womlp_ref: (3, C, C) [Wo^T, W1^T, W2^T]           operand dtype
    bvec_ref : (8, C)   [bv, bo, b1, b2, g1, be1, g2, be2]  f32
    sel_ref  : (C, n_head)  block-diagonal head selector, f32
    selt_ref : (n_head, C)  its transpose, f32
    out_ref  : (Bt, HWt, C) f32
    """
    f32 = jnp.float32
    op_dtype = kpe_ref.dtype
    Bt, N, HWt, C = kpe_ref.shape
    rows_q = Bt * HWt
    rows_kv = Bt * N * HWt

    kpe = kpe_ref[...]                                     # (Bt, N, HWt, C)
    vraw = vraw_ref[...]

    # ---- fused Q/K projection: one (rows_kv, C) @ (C, 2C) MXU dot ----------
    qk = jnp.dot(kpe.reshape(rows_kv, C), wqk_ref[...],
                 preferred_element_type=f32) + bqk_ref[...]
    qk = qk.reshape(Bt, N, HWt, 2 * C)
    qp = qk[:, 0:1, :, :C]                                 # scaled q (agent 0)
    kp = qk[:, :, :, C:]                                   # k, all agents

    # ---- V projection (batched over agents & batch elements) ---------------
    vp = jnp.dot(vraw.reshape(rows_kv, C), wv_ref[...],
                 preferred_element_type=f32) + bvec_ref[0]  # (rows_kv, C)

    # ---- per-head scores via constant block-diagonal selector (MXU) --------
    prod = kp * qp                                          # (Bt, N, HWt, C) f32
    scores = jnp.dot(prod.reshape(rows_kv, C), sel_ref[...],
                     preferred_element_type=f32).reshape(Bt, N, HWt, n_head)

    # ---- additive -1e9 mask for padded agents (from SMEM record_len) -------
    b0 = pl.program_id(0) * Bt
    b_iota = lax.broadcasted_iota(jnp.int32, (Bt, N, 1, n_head), 0)
    n_iota = lax.broadcasted_iota(jnp.int32, (Bt, N, 1, n_head), 1)
    neg = jnp.full((Bt, N, 1, n_head), -1e9, f32)
    bias = jnp.zeros((Bt, N, 1, n_head), f32)
    for i in range(Bt):                                     # Bt small & static
        rl = rl_ref[b0 + i]
        bias = jnp.where((b_iota == i) & (n_iota >= rl), neg, bias)
    scores = scores + bias

    # ---- softmax over the agent axis ----------------------------------------
    m = jnp.max(scores, axis=1, keepdims=True)
    e = jnp.exp(scores - m)
    denom = jnp.sum(e, axis=1, keepdims=True)               # >= 1 (>=1 valid agent)
    inv = pl.reciprocal(denom, approx=True)                 # EUP
    inv = inv * (2.0 - denom * inv)                         # one Newton step -> ~f32
    attn = e * inv                                          # (Bt, N, HWt, n_head)

    # ---- context: broadcast head weights to channels via selector^T (MXU) ---
    attn_c = jnp.dot(attn.reshape(rows_kv, n_head), selt_ref[...],
                     preferred_element_type=f32)            # (rows_kv, C)
    ctx = jnp.sum((attn_c * vp).reshape(Bt, N, HWt, C), axis=1).reshape(rows_q, C)

    # ---- out-proj + residual + LN + FFN + residual + LN --------------------
    q_res = qres_ref[...].astype(f32).reshape(rows_q, C)    # f32 residual
    attn_out = jnp.dot(ctx.astype(op_dtype), womlp_ref[0],
                       preferred_element_type=f32) + bvec_ref[1]
    out1 = _layernorm(q_res + attn_out, bvec_ref[4], bvec_ref[5])
    hmid = jnp.maximum(
        jnp.dot(out1.astype(op_dtype), womlp_ref[1],
                preferred_element_type=f32) + bvec_ref[2], 0.0)
    ffn = jnp.dot(hmid.astype(op_dtype), womlp_ref[2],
                  preferred_element_type=f32) + bvec_ref[3]
    out2 = _layernorm(out1 + ffn, bvec_ref[6], bvec_ref[7])

    out_ref[...] = out2.reshape(Bt, HWt, C).astype(out_ref.dtype)


def transformer_fusion(kpe, vraw, record_len, params, n_head,
                       batch_block=4, hw_block=1024,
                       operand_dtype=jnp.bfloat16):
    """kpe / vraw: (B, N_max, HW, C) float32; record_len: (B,) int.

    Returns the fused feature (B, HW, C) float32 (agent-0 view per batch elem).

    Tuning per generation:
      * v5e / v6e (1 TensorCore): raise `batch_block` / `hw_block` so the batch
        runs in few grid steps (each step costs ~0.35 us fixed overhead).
      * v7x (2 TensorCores, 64 MiB VMEM): keep >=2 balanced parallel grid steps
        and size (Bt, N, HWt, C) tiles against ~48 MiB scoped VMEM.
    bf16 operands are fine on all generations (only the MXU sees them; softmax,
    LayerNorm, residuals and the agent-0 residual input stay f32).
    """
    B, N, HW, C = kpe.shape
    assert C % n_head == 0
    hd = C // n_head

    Bt = max(1, min(batch_block, B))
    Bpad = -(-B // Bt) * Bt

    HWt = max(16, min(hw_block, HW))
    HWt = -(-HWt // 16) * 16                 # sublane multiple (bf16 & f32 safe)
    HWpad = -(-HW // HWt) * HWt

    q_res = kpe[:, 0]                         # f32 agent-0 residual (pre-rounding)

    pad_b, pad_hw = Bpad - B, HWpad - HW
    if pad_b or pad_hw:
        kpe = jnp.pad(kpe, ((0, pad_b), (0, 0), (0, pad_hw), (0, 0)))
        vraw = jnp.pad(vraw, ((0, pad_b), (0, 0), (0, pad_hw), (0, 0)))
        q_res = jnp.pad(q_res, ((0, pad_b), (0, pad_hw), (0, 0)))
        record_len = jnp.pad(record_len, (0, pad_b), constant_values=1)
    record_len = record_len.astype(jnp.int32)

    kpe = kpe.astype(operand_dtype)
    vraw = vraw.astype(operand_dtype)
    q_res = q_res.astype(jnp.float32)

    # fused [Wq|Wk] with the PyTorch MHA q-scaling folded into Wq / bq
    scale = 1.0 / float(np.sqrt(hd))
    wqk = jnp.concatenate([params['Wq'].T * scale, params['Wk'].T],
                          axis=1).astype(operand_dtype)                  # (C, 2C)
    bqk = jnp.concatenate([params['bq'] * scale,
                           params['bk']])[None, :].astype(jnp.float32)   # (1, 2C)
    wv = params['Wv'].T.astype(operand_dtype)                            # (C, C)
    womlp = jnp.stack([params['Wo'].T, params['W1'].T,
                       params['W2'].T]).astype(operand_dtype)            # (3, C, C)
    bvec = jnp.stack([params['bv'], params['bo'], params['b1'], params['b2'],
                      params['g1'], params['be1'],
                      params['g2'], params['be2']]).astype(jnp.float32)  # (8, C)

    # constant block-diagonal head selectors (built once, passed as inputs)
    sel_np = ((np.arange(C)[:, None] // hd) ==
              np.arange(n_head)[None, :]).astype(np.float32)             # (C, n_head)
    sel = jnp.asarray(sel_np)
    sel_t = jnp.asarray(sel_np.T)

    grid = (Bpad // Bt, HWpad // HWt)
    out = pl.pallas_call(
        functools.partial(_fusion_kernel, n_head),
        out_shape=jax.ShapeDtypeStruct((Bpad, HWpad, C), jnp.float32),
        grid_spec=pltpu.PrefetchScalarGridSpec(
            num_scalar_prefetch=1,
            grid=grid,
            in_specs=[
                pl.BlockSpec((Bt, N, HWt, C), lambda b, h, rl: (b, 0, h, 0)),
                pl.BlockSpec((Bt, N, HWt, C), lambda b, h, rl: (b, 0, h, 0)),
                pl.BlockSpec((Bt, HWt, C), lambda b, h, rl: (b, h, 0)),
                pl.BlockSpec((C, 2 * C), lambda b, h, rl: (0, 0)),
                pl.BlockSpec((1, 2 * C), lambda b, h, rl: (0, 0)),
                pl.BlockSpec((C, C), lambda b, h, rl: (0, 0)),
                pl.BlockSpec((3, C, C), lambda b, h, rl: (0, 0, 0)),
                pl.BlockSpec((8, C), lambda b, h, rl: (0, 0)),
                pl.BlockSpec((C, n_head), lambda b, h, rl: (0, 0)),
                pl.BlockSpec((n_head, C), lambda b, h, rl: (0, 0)),
            ],
            out_specs=pl.BlockSpec((Bt, HWt, C), lambda b, h, rl: (b, h, 0)),
        ),
        compiler_params=pltpu.CompilerParams(
            dimension_semantics=("parallel", "parallel"),
            vmem_limit_bytes=48 * 1024 * 1024),
    )(record_len, kpe, vraw, q_res, wqk, bqk, wv, womlp, bvec, sel, sel_t)
    return out[:B, :HW]                                                  # (B, HW, C)


# ---------------- pure-JAX reference (for correctness check) ----------------
def _ref_forward(kpe, vraw, record_len, p, n_head, operand_dtype=jnp.float32):
    f32 = jnp.float32
    B, Nmax, HW, C = kpe.shape
    hd = C // n_head
    scale = 1.0 / np.sqrt(hd)
    q_res_all = kpe[:, 0].astype(f32)                     # f32 residual path
    # mirror the operand-dtype rounding the kernel applies to MXU operands
    kpe_r = kpe.astype(operand_dtype).astype(f32)
    vraw_r = vraw.astype(operand_dtype).astype(f32)
    Wq = (p['Wq'] * scale).astype(operand_dtype).astype(f32)
    Wk = p['Wk'].astype(operand_dtype).astype(f32)
    Wv = p['Wv'].astype(operand_dtype).astype(f32)
    Wo = p['Wo'].astype(operand_dtype).astype(f32)
    W1 = p['W1'].astype(operand_dtype).astype(f32)
    W2 = p['W2'].astype(operand_dtype).astype(f32)
    bq = (p['bq'] * scale).astype(f32)

    outs = []
    for b in range(B):
        N = int(record_len[b])
        q = kpe_r[b, 0]
        k = kpe_r[b, :N]
        v = vraw_r[b, :N]
        qp = q @ Wq.T + bq                                  # scale folded in
        kp = jnp.einsum('nsc,dc->nsd', k, Wk) + p['bk']
        vp = jnp.einsum('nsc,dc->nsd', v, Wv) + p['bv']
        qh = qp.reshape(HW, n_head, hd)
        kh = kp.reshape(N, HW, n_head, hd)
        vh = vp.reshape(N, HW, n_head, hd)
        scores = jnp.einsum('shd,nshd->nsh', qh, kh)
        attn = jax.nn.softmax(scores, axis=0)
        ctx = jnp.einsum('nsh,nshd->shd', attn, vh).reshape(HW, C)
        attn_out = ctx.astype(operand_dtype).astype(f32) @ Wo.T + p['bo']
        out1 = _layernorm(q_res_all[b] + attn_out, p['g1'], p['be1'])
        h = jax.nn.relu(out1.astype(operand_dtype).astype(f32) @ W1.T + p['b1'])
        ffn = h.astype(operand_dtype).astype(f32) @ W2.T + p['b2']
        outs.append(_layernorm(out1 + ffn, p['g2'], p['be2']))
    return jnp.stack(outs)


if __name__ == "__main__":
    B, N_max, C, H, W, n_head = 4, 3, 32, 8, 8, 8
    HW = H * W
    record_len = jnp.array([2, 3, 1, 3], dtype=jnp.int32)

    key = jax.random.PRNGKey(0)
    keys = jax.random.split(key, 16)

    # deterministic synthetic parameters (PyTorch module shapes)
    params = {
        'Wq': jax.random.normal(keys[0], (C, C), jnp.float32) * 0.05,
        'Wk': jax.random.normal(keys[1], (C, C), jnp.float32) * 0.05,
        'Wv': jax.random.normal(keys[2], (C, C), jnp.float32) * 0.05,
        'Wo': jax.random.normal(keys[3], (C, C), jnp.float32) * 0.05,
        'W1': jax.random.normal(keys[4], (C, C), jnp.float32) * 0.05,
        'W2': jax.random.normal(keys[5], (C, C), jnp.float32) * 0.05,
        'bq': jax.random.normal(keys[6], (C,), jnp.float32) * 0.02,
        'bk': jax.random.normal(keys[7], (C,), jnp.float32) * 0.02,
        'bv': jax.random.normal(keys[8], (C,), jnp.float32) * 0.02,
        'bo': jax.random.normal(keys[9], (C,), jnp.float32) * 0.02,
        'b1': jax.random.normal(keys[10], (C,), jnp.float32) * 0.02,
        'b2': jax.random.normal(keys[11], (C,), jnp.float32) * 0.02,
        'g1': jnp.ones((C,), jnp.float32),
        'be1': jnp.zeros((C,), jnp.float32),
        'g2': jnp.ones((C,), jnp.float32),
        'be2': jnp.zeros((C,), jnp.float32),
    }

    # NCHW inputs as PyTorch would provide; padded to N_max agents (zeros).
    feat_nchw = jax.random.normal(keys[12], (B, N_max, C, H, W), jnp.float32)
    feat_pe_nchw = feat_nchw + jax.random.normal(
        keys[13], (B, N_max, C, H, W), jnp.float32) * 0.1
    valid = (jnp.arange(N_max)[None, :] < record_len[:, None]).astype(jnp.float32)
    feat_nchw = feat_nchw * valid[:, :, None, None, None]
    feat_pe_nchw = feat_pe_nchw * valid[:, :, None, None, None]

    # NCHW -> (B, N_max, HW, C) channels-last for the kernel
    kpe = feat_pe_nchw.transpose(0, 1, 3, 4, 2).reshape(B, N_max, HW, C)
    vraw = feat_nchw.transpose(0, 1, 3, 4, 2).reshape(B, N_max, HW, C)

    # batch_block=2 / hw_block=32 -> 2x2 grid: exercises the HW tiling and
    # gives a dual-TC chip (v7x) >=2 parallel steps even at this toy size.
    out_hwc = transformer_fusion(kpe, vraw, record_len, params, n_head,
                                 batch_block=2, hw_block=32,
                                 operand_dtype=jnp.bfloat16)
    out_hwc = jax.block_until_ready(out_hwc)

    # back to PyTorch output layout: (B, C, H, W)
    x_fuse = out_hwc.reshape(B, H, W, C).transpose(0, 3, 1, 2)
    x_fuse = jax.block_until_ready(x_fuse)
    assert x_fuse.shape == (B, C, H, W)

    ref = _ref_forward(kpe, vraw, np.asarray(record_len), params, n_head,
                       operand_dtype=jnp.bfloat16)
    np.testing.assert_allclose(np.asarray(out_hwc), np.asarray(ref),
                               rtol=2e-3, atol=2e-3)

    print("KERNEL_OK")
</pallas_src>

<mosaic_0001>
module attributes {stable_mosaic.version = 11 : i64} {
  func.func @_fusion_kernel(%arg0: i32, %arg1: i32, %arg2: memref<4xi32, #tpu.memory_space<smem>>, %arg3: memref<2x3x32x32xbf16, #tpu.memory_space<vmem>>, %arg4: memref<2x3x32x32xbf16, #tpu.memory_space<vmem>>, %arg5: memref<2x32x32xf32, #tpu.memory_space<vmem>>, %arg6: memref<32x64xbf16, #tpu.memory_space<vmem>>, %arg7: memref<1x64xf32, #tpu.memory_space<vmem>>, %arg8: memref<32x32xbf16, #tpu.memory_space<vmem>>, %arg9: memref<3x32x32xbf16, #tpu.memory_space<vmem>>, %arg10: memref<8x32xf32, #tpu.memory_space<vmem>>, %arg11: memref<32x8xf32, #tpu.memory_space<vmem>>, %arg12: memref<8x32xf32, #tpu.memory_space<vmem>>, %arg13: memref<2x32x32xf32, #tpu.memory_space<vmem>>) attributes {dimension_semantics = [#tpu.dimension_semantics<parallel>, #tpu.dimension_semantics<parallel>], iteration_bounds = array<i64: 2, 2>, scalar_prefetch = 1 : i64, scratch_operands = 0 : i64, tpu.core_type = #tpu.core_type<tc>, window_params = [{transform_indices = @transform_0, window_bounds = array<i64: 2, 3, 32, 32>}, {transform_indices = @transform_1, window_bounds = array<i64: 2, 3, 32, 32>}, {transform_indices = @transform_2, window_bounds = array<i64: 2, 32, 32>}, {pipeline_mode = #tpu.pipeline_mode<synchronous>, transform_indices = @transform_3, window_bounds = array<i64: 32, 64>}, {pipeline_mode = #tpu.pipeline_mode<synchronous>, transform_indices = @transform_4, window_bounds = array<i64: 1, 64>}, {pipeline_mode = #tpu.pipeline_mode<synchronous>, transform_indices = @transform_5, window_bounds = array<i64: 32, 32>}, {pipeline_mode = #tpu.pipeline_mode<synchronous>, transform_indices = @transform_6, window_bounds = array<i64: 3, 32, 32>}, {pipeline_mode = #tpu.pipeline_mode<synchronous>, transform_indices = @transform_7, window_bounds = array<i64: 8, 32>}, {pipeline_mode = #tpu.pipeline_mode<synchronous>, transform_indices = @transform_8, window_bounds = array<i64: 32, 8>}, {pipeline_mode = #tpu.pipeline_mode<synchronous>, transform_indices = @transform_9, window_bounds = array<i64: 8, 32>}, {transform_indices = @transform_10, window_bounds = array<i64: 2, 32, 32>}]} {
    %c0 = arith.constant 0 : index
    %c0_0 = arith.constant 0 : index
    %c0_1 = arith.constant 0 : index
    %c0_2 = arith.constant 0 : index
    %0 = vector.load %arg3[%c0, %c0_0, %c0_1, %c0_2] : memref<2x3x32x32xbf16, #tpu.memory_space<vmem>>, vector<2x3x32x32xbf16>
    %c0_3 = arith.constant 0 : index
    %c0_4 = arith.constant 0 : index
    %c0_5 = arith.constant 0 : index
    %c0_6 = arith.constant 0 : index
    %1 = vector.load %arg4[%c0_3, %c0_4, %c0_5, %c0_6] : memref<2x3x32x32xbf16, #tpu.memory_space<vmem>>, vector<2x3x32x32xbf16>
    %2 = vector.shape_cast %0 : vector<2x3x32x32xbf16> to vector<192x32xbf16>
    %c0_7 = arith.constant 0 : index
    %c0_8 = arith.constant 0 : index
    %3 = vector.load %arg6[%c0_7, %c0_8] : memref<32x64xbf16, #tpu.memory_space<vmem>>, vector<32x64xbf16>
    %cst = arith.constant dense<0.000000e+00> : vector<192x64xf32>
    %4 = tpu.matmul %2, %3, %cst {dimension_numbers = #tpu.dot_dimension_numbers<[1], [0], [0], [1], [0, 0, 1, 1], [], []>} : vector<192x32xbf16>, vector<32x64xbf16>, vector<192x64xf32> -> vector<192x64xf32>
    %c0_9 = arith.constant 0 : index
    %c0_10 = arith.constant 0 : index
    %5 = vector.load %arg7[%c0_9, %c0_10] : memref<1x64xf32, #tpu.memory_space<vmem>>, vector<1x64xf32>
    %6 = vector.broadcast %5 : vector<1x64xf32> to vector<192x64xf32>
    %7 = arith.addf %4, %6 : vector<192x64xf32>
    %8 = vector.shape_cast %7 : vector<192x64xf32> to vector<2x3x32x64xf32>
    %9 = vector.extract_strided_slice %8 {offsets = [0, 0, 0, 0], sizes = [2, 1, 32, 32], strides = [1, 1, 1, 1]} : vector<2x3x32x64xf32> to vector<2x1x32x32xf32>
    %10 = vector.extract_strided_slice %8 {offsets = [0, 0, 0, 32], sizes = [2, 3, 32, 32], strides = [1, 1, 1, 1]} : vector<2x3x32x64xf32> to vector<2x3x32x32xf32>
    %11 = vector.shape_cast %1 : vector<2x3x32x32xbf16> to vector<192x32xbf16>
    %c0_11 = arith.constant 0 : index
    %c0_12 = arith.constant 0 : index
    %12 = vector.load %arg8[%c0_11, %c0_12] : memref<32x32xbf16, #tpu.memory_space<vmem>>, vector<32x32xbf16>
    %cst_13 = arith.constant dense<0.000000e+00> : vector<192x32xf32>
    %13 = tpu.matmul %11, %12, %cst_13 {dimension_numbers = #tpu.dot_dimension_numbers<[1], [0], [0], [1], [0, 0, 1, 1], [], []>} : vector<192x32xbf16>, vector<32x32xbf16>, vector<192x32xf32> -> vector<192x32xf32>
    %c0_14 = arith.constant 0 : index
    %c0_15 = arith.constant 0 : index
    %14 = vector.load %arg10[%c0_14, %c0_15] : memref<8x32xf32, #tpu.memory_space<vmem>>, vector<1x32xf32>
    %15 = vector.shape_cast %14 : vector<1x32xf32> to vector<32xf32>
    %16 = vector.shape_cast %15 : vector<32xf32> to vector<1x32xf32>
    %17 = vector.broadcast %16 : vector<1x32xf32> to vector<192x32xf32>
    %18 = arith.addf %13, %17 : vector<192x32xf32>
    %19 = vector.broadcast %9 : vector<2x1x32x32xf32> to vector<2x3x32x32xf32>
    %20 = arith.mulf %10, %19 : vector<2x3x32x32xf32>
    %21 = vector.shape_cast %20 : vector<2x3x32x32xf32> to vector<192x32xf32>
    %c0_16 = arith.constant 0 : index
    %c0_17 = arith.constant 0 : index
    %22 = vector.load %arg11[%c0_16, %c0_17] : memref<32x8xf32, #tpu.memory_space<vmem>>, vector<32x8xf32>
    %cst_18 = arith.constant dense<0.000000e+00> : vector<192x8xf32>
    %23 = tpu.matmul %21, %22, %cst_18 {dimension_numbers = #tpu.dot_dimension_numbers<[1], [0], [0], [1], [0, 0, 1, 1], [], []>} : vector<192x32xf32>, vector<32x8xf32>, vector<192x8xf32> -> vector<192x8xf32>
    %24 = vector.shape_cast %23 : vector<192x8xf32> to vector<2x3x32x8xf32>
    %c2_i32 = arith.constant 2 : i32
    %25 = arith.muli %arg0, %c2_i32 : i32
    %26 = tpu.iota {dimensions = array<i32: 0>} : vector<2x3x1x8xi32>
    %27 = tpu.iota {dimensions = array<i32: 1>} : vector<2x3x1x8xi32>
    %cst_19 = arith.constant -1.000000e+09 : f32
    %28 = vector.broadcast %cst_19 : f32 to vector<2x3x1x8xf32>
    %cst_20 = arith.constant 0.000000e+00 : f32
    %29 = vector.broadcast %cst_20 : f32 to vector<2x3x1x8xf32>
    %c0_i32 = arith.constant 0 : i32
    %30 = arith.addi %25, %c0_i32 : i32
    %31 = arith.index_cast %30 : i32 to index
    %32 = memref.load %arg2[%31] : memref<4xi32, #tpu.memory_space<smem>>
    %c0_i32_21 = arith.constant 0 : i32
    %33 = vector.broadcast %c0_i32_21 : i32 to vector<2x3x1x8xi32>
    %34 = arith.cmpi eq, %26, %33 : vector<2x3x1x8xi32>
    %35 = vector.broadcast %32 : i32 to vector<2x3x1x8xi32>
    %36 = arith.cmpi sge, %27, %35 : vector<2x3x1x8xi32>
    %37 = arith.andi %34, %36 : vector<2x3x1x8xi1>
    %38 = arith.select %37, %28, %29 : vector<2x3x1x8xi1>, vector<2x3x1x8xf32>
    %c1_i32 = arith.constant 1 : i32
    %39 = arith.addi %25, %c1_i32 : i32
    %40 = arith.index_cast %39 : i32 to index
    %41 = memref.load %arg2[%40] : memref<4xi32, #tpu.memory_space<smem>>
    %c1_i32_22 = arith.constant 1 : i32
    %42 = vector.broadcast %c1_i32_22 : i32 to vector<2x3x1x8xi32>
    %43 = arith.cmpi eq, %26, %42 : vector<2x3x1x8xi32>
    %44 = vector.broadcast %41 : i32 to vector<2x3x1x8xi32>
    %45 = arith.cmpi sge, %27, %44 : vector<2x3x1x8xi32>
    %46 = arith.andi %43, %45 : vector<2x3x1x8xi1>
    %47 = arith.select %46, %28, %38 : vector<2x3x1x8xi1>, vector<2x3x1x8xf32>
    %48 = vector.broadcast %47 : vector<2x3x1x8xf32> to vector<2x3x32x8xf32>
    %49 = arith.addf %24, %48 : vector<2x3x32x8xf32>
    %cst_23 = arith.constant dense<0xFF800000> : vector<2x32x8xf32>
    %50 = vector.multi_reduction <maximumf>, %49, %cst_23 [1] : vector<2x3x32x8xf32> to vector<2x32x8xf32>
    %51 = vector.shape_cast %50 : vector<2x32x8xf32> to vector<2x1x32x8xf32>
    %52 = vector.broadcast %51 : vector<2x1x32x8xf32> to vector<2x3x32x8xf32>
    %53 = arith.subf %49, %52 : vector<2x3x32x8xf32>
    %54 = math.exp %53 : vector<2x3x32x8xf32>
    %cst_24 = arith.constant dense<0.000000e+00> : vector<2x32x8xf32>
    %55 = vector.multi_reduction <add>, %54, %cst_24 [1] : vector<2x3x32x8xf32> to vector<2x32x8xf32>
    %56 = vector.shape_cast %55 : vector<2x32x8xf32> to vector<2x1x32x8xf32>
    %57 = tpu.reciprocal %56 {approx = true} : vector<2x1x32x8xf32> -> vector<2x1x32x8xf32>
    %58 = arith.mulf %56, %57 : vector<2x1x32x8xf32>
    %cst_25 = arith.constant 2.000000e+00 : f32
    %59 = vector.broadcast %cst_25 : f32 to vector<2x1x32x8xf32>
    %60 = arith.subf %59, %58 : vector<2x1x32x8xf32>
    %61 = arith.mulf %57, %60 : vector<2x1x32x8xf32>
    %62 = vector.broadcast %61 : vector<2x1x32x8xf32> to vector<2x3x32x8xf32>
    %63 = arith.mulf %54, %62 : vector<2x3x32x8xf32>
    %64 = vector.shape_cast %63 : vector<2x3x32x8xf32> to vector<192x8xf32>
    %c0_26 = arith.constant 0 : index
    %c0_27 = arith.constant 0 : index
    %65 = vector.load %arg12[%c0_26, %c0_27] : memref<8x32xf32, #tpu.memory_space<vmem>>, vector<8x32xf32>
    %cst_28 = arith.constant dense<0.000000e+00> : vector<192x32xf32>
    %66 = tpu.matmul %64, %65, %cst_28 {dimension_numbers = #tpu.dot_dimension_numbers<[1], [0], [0], [1], [0, 0, 1, 1], [], []>} : vector<192x8xf32>, vector<8x32xf32>, vector<192x32xf32> -> vector<192x32xf32>
    %67 = arith.mulf %66, %18 : vector<192x32xf32>
    %68 = vector.shape_cast %67 : vector<192x32xf32> to vector<2x3x32x32xf32>
    %cst_29 = arith.constant dense<0.000000e+00> : vector<2x32x32xf32>
    %69 = vector.multi_reduction <add>, %68, %cst_29 [1] : vector<2x3x32x32xf32> to vector<2x32x32xf32>
    %70 = vector.shape_cast %69 : vector<2x32x32xf32> to vector<64x32xf32>
    %c0_30 = arith.constant 0 : index
    %c0_31 = arith.constant 0 : index
    %c0_32 = arith.constant 0 : index
    %71 = vector.load %arg5[%c0_30, %c0_31, %c0_32] : memref<2x32x32xf32, #tpu.memory_space<vmem>>, vector<2x32x32xf32>
    %72 = vector.shape_cast %71 : vector<2x32x32xf32> to vector<64x32xf32>
    %73 = arith.truncf %70 : vector<64x32xf32> to vector<64x32xbf16>
    %c0_33 = arith.constant 0 : index
    %c0_34 = arith.constant 0 : index
    %c0_35 = arith.constant 0 : index
    %74 = vector.load %arg9[%c0_33, %c0_34, %c0_35] : memref<3x32x32xbf16, #tpu.memory_space<vmem>>, vector<1x32x32xbf16>
    %75 = vector.shape_cast %74 : vector<1x32x32xbf16> to vector<32x32xbf16>
    %cst_36 = arith.constant dense<0.000000e+00> : vector<64x32xf32>
    %76 = tpu.matmul %73, %75, %cst_36 {dimension_numbers = #tpu.dot_dimension_numbers<[1], [0], [0], [1], [0, 0, 1, 1], [], []>} : vector<64x32xbf16>, vector<32x32xbf16>, vector<64x32xf32> -> vector<64x32xf32>
    %c1 = arith.constant 1 : index
    %c0_37 = arith.constant 0 : index
    %77 = vector.load %arg10[%c1, %c0_37] : memref<8x32xf32, #tpu.memory_space<vmem>>, vector<1x32xf32>
    %78 = vector.shape_cast %77 : vector<1x32xf32> to vector<32xf32>
    %79 = vector.shape_cast %78 : vector<32xf32> to vector<1x32xf32>
    %80 = vector.broadcast %79 : vector<1x32xf32> to vector<64x32xf32>
    %81 = arith.addf %76, %80 : vector<64x32xf32>
    %82 = arith.addf %72, %81 : vector<64x32xf32>
    %c4 = arith.constant 4 : index
    %c0_38 = arith.constant 0 : index
    %83 = vector.load %arg10[%c4, %c0_38] : memref<8x32xf32, #tpu.memory_space<vmem>>, vector<1x32xf32>
    %84 = vector.shape_cast %83 : vector<1x32xf32> to vector<32xf32>
    %c5 = arith.constant 5 : index
    %c0_39 = arith.constant 0 : index
    %85 = vector.load %arg10[%c5, %c0_39] : memref<8x32xf32, #tpu.memory_space<vmem>>, vector<1x32xf32>
    %86 = vector.shape_cast %85 : vector<1x32xf32> to vector<32xf32>
    %cst_40 = arith.constant dense<0.000000e+00> : vector<64xf32>
    %87 = vector.multi_reduction <add>, %82, %cst_40 [1] : vector<64x32xf32> to vector<64xf32>
    %88 = vector.shape_cast %87 : vector<64xf32> to vector<64x1xf32>
    %cst_41 = arith.constant 3.200000e+01 : f32
    %89 = vector.broadcast %cst_41 : f32 to vector<64x1xf32>
    %90 = arith.divf %88, %89 : vector<64x1xf32>
    %91 = vector.broadcast %90 : vector<64x1xf32> to vector<64x32xf32>
    %92 = arith.subf %82, %91 : vector<64x32xf32>
    %93 = arith.mulf %92, %92 : vector<64x32xf32>
    %cst_42 = arith.constant dense<0.000000e+00> : vector<64xf32>
    %94 = vector.multi_reduction <add>, %93, %cst_42 [1] : vector<64x32xf32> to vector<64xf32>
    %95 = vector.shape_cast %94 : vector<64xf32> to vector<64x1xf32>
    %cst_43 = arith.constant 3.200000e+01 : f32
    %96 = vector.broadcast %cst_43 : f32 to vector<64x1xf32>
    %97 = arith.divf %95, %96 : vector<64x1xf32>
    %98 = vector.broadcast %90 : vector<64x1xf32> to vector<64x32xf32>
    %99 = arith.subf %82, %98 : vector<64x32xf32>
    %cst_44 = arith.constant 9.99999974E-6 : f32
    %100 = vector.broadcast %cst_44 : f32 to vector<64x1xf32>
    %101 = arith.addf %97, %100 : vector<64x1xf32>
    %102 = math.rsqrt %101 : vector<64x1xf32>
    %103 = vector.broadcast %102 : vector<64x1xf32> to vector<64x32xf32>
    %104 = arith.mulf %99, %103 : vector<64x32xf32>
    %105 = vector.shape_cast %84 : vector<32xf32> to vector<1x32xf32>
    %106 = vector.broadcast %105 : vector<1x32xf32> to vector<64x32xf32>
    %107 = arith.mulf %104, %106 : vector<64x32xf32>
    %108 = vector.shape_cast %86 : vector<32xf32> to vector<1x32xf32>
    %109 = vector.broadcast %108 : vector<1x32xf32> to vector<64x32xf32>
    %110 = arith.addf %107, %109 : vector<64x32xf32>
    %111 = arith.truncf %110 : vector<64x32xf32> to vector<64x32xbf16>
    %c1_45 = arith.constant 1 : index
    %c0_46 = arith.constant 0 : index
    %c0_47 = arith.constant 0 : index
    %112 = vector.load %arg9[%c1_45, %c0_46, %c0_47] : memref<3x32x32xbf16, #tpu.memory_space<vmem>>, vector<1x32x32xbf16>
    %113 = vector.shape_cast %112 : vector<1x32x32xbf16> to vector<32x32xbf16>
    %cst_48 = arith.constant dense<0.000000e+00> : vector<64x32xf32>
    %114 = tpu.matmul %111, %113, %cst_48 {dimension_numbers = #tpu.dot_dimension_numbers<[1], [0], [0], [1], [0, 0, 1, 1], [], []>} : vector<64x32xbf16>, vector<32x32xbf16>, vector<64x32xf32> -> vector<64x32xf32>
    %c2 = arith.constant 2 : index
    %c0_49 = arith.constant 0 : index
    %115 = vector.load %arg10[%c2, %c0_49] : memref<8x32xf32, #tpu.memory_space<vmem>>, vector<1x32xf32>
    %116 = vector.shape_cast %115 : vector<1x32xf32> to vector<32xf32>
    %117 = vector.shape_cast %116 : vector<32xf32> to vector<1x32xf32>
    %118 = vector.broadcast %117 : vector<1x32xf32> to vector<64x32xf32>
    %119 = arith.addf %114, %118 : vector<64x32xf32>
    %cst_50 = arith.constant 0.000000e+00 : f32
    %120 = vector.broadcast %cst_50 : f32 to vector<64x32xf32>
    %121 = arith.maximumf %119, %120 : vector<64x32xf32>
    %122 = arith.truncf %121 : vector<64x32xf32> to vector<64x32xbf16>
    %c2_51 = arith.constant 2 : index
    %c0_52 = arith.constant 0 : index
    %c0_53 = arith.constant 0 : index
    %123 = vector.load %arg9[%c2_51, %c0_52, %c0_53] : memref<3x32x32xbf16, #tpu.memory_space<vmem>>, vector<1x32x32xbf16>
    %124 = vector.shape_cast %123 : vector<1x32x32xbf16> to vector<32x32xbf16>
    %cst_54 = arith.constant dense<0.000000e+00> : vector<64x32xf32>
    %125 = tpu.matmul %122, %124, %cst_54 {dimension_numbers = #tpu.dot_dimension_numbers<[1], [0], [0], [1], [0, 0, 1, 1], [], []>} : vector<64x32xbf16>, vector<32x32xbf16>, vector<64x32xf32> -> vector<64x32xf32>
    %c3 = arith.constant 3 : index
    %c0_55 = arith.constant 0 : index
    %126 = vector.load %arg10[%c3, %c0_55] : memref<8x32xf32, #tpu.memory_space<vmem>>, vector<1x32xf32>
    %127 = vector.shape_cast %126 : vector<1x32xf32> to vector<32xf32>
    %128 = vector.shape_cast %127 : vector<32xf32> to vector<1x32xf32>
    %129 = vector.broadcast %128 : vector<1x32xf32> to vector<64x32xf32>
    %130 = arith.addf %125, %129 : vector<64x32xf32>
    %131 = arith.addf %110, %130 : vector<64x32xf32>
    %c6 = arith.constant 6 : index
    %c0_56 = arith.constant 0 : index
    %132 = vector.load %arg10[%c6, %c0_56] : memref<8x32xf32, #tpu.memory_space<vmem>>, vector<1x32xf32>
    %133 = vector.shape_cast %132 : vector<1x32xf32> to vector<32xf32>
    %c7 = arith.constant 7 : index
    %c0_57 = arith.constant 0 : index
    %134 = vector.load %arg10[%c7, %c0_57] : memref<8x32xf32, #tpu.memory_space<vmem>>, vector<1x32xf32>
    %135 = vector.shape_cast %134 : vector<1x32xf32> to vector<32xf32>
    %cst_58 = arith.constant dense<0.000000e+00> : vector<64xf32>
    %136 = vector.multi_reduction <add>, %131, %cst_58 [1] : vector<64x32xf32> to vector<64xf32>
    %137 = vector.shape_cast %136 : vector<64xf32> to vector<64x1xf32>
    %cst_59 = arith.constant 3.200000e+01 : f32
    %138 = vector.broadcast %cst_59 : f32 to vector<64x1xf32>
    %139 = arith.divf %137, %138 : vector<64x1xf32>
    %140 = vector.broadcast %139 : vector<64x1xf32> to vector<64x32xf32>
    %141 = arith.subf %131, %140 : vector<64x32xf32>
    %142 = arith.mulf %141, %141 : vector<64x32xf32>
    %cst_60 = arith.constant dense<0.000000e+00> : vector<64xf32>
    %143 = vector.multi_reduction <add>, %142, %cst_60 [1] : vector<64x32xf32> to vector<64xf32>
    %144 = vector.shape_cast %143 : vector<64xf32> to vector<64x1xf32>
    %cst_61 = arith.constant 3.200000e+01 : f32
    %145 = vector.broadcast %cst_61 : f32 to vector<64x1xf32>
    %146 = arith.divf %144, %145 : vector<64x1xf32>
    %147 = vector.broadcast %139 : vector<64x1xf32> to vector<64x32xf32>
    %148 = arith.subf %131, %147 : vector<64x32xf32>
    %cst_62 = arith.constant 9.99999974E-6 : f32
    %149 = vector.broadcast %cst_62 : f32 to vector<64x1xf32>
    %150 = arith.addf %146, %149 : vector<64x1xf32>
    %151 = math.rsqrt %150 : vector<64x1xf32>
    %152 = vector.broadcast %151 : vector<64x1xf32> to vector<64x32xf32>
    %153 = arith.mulf %148, %152 : vector<64x32xf32>
    %154 = vector.shape_cast %133 : vector<32xf32> to vector<1x32xf32>
    %155 = vector.broadcast %154 : vector<1x32xf32> to vector<64x32xf32>
    %156 = arith.mulf %153, %155 : vector<64x32xf32>
    %157 = vector.shape_cast %135 : vector<32xf32> to vector<1x32xf32>
    %158 = vector.broadcast %157 : vector<1x32xf32> to vector<64x32xf32>
    %159 = arith.addf %156, %158 : vector<64x32xf32>
    %160 = vector.shape_cast %159 : vector<64x32xf32> to vector<2x32x32xf32>
    %c0_63 = arith.constant 0 : index
    %c0_64 = arith.constant 0 : index
    %c0_65 = arith.constant 0 : index
    %161 = vector.load %arg13[%c0_63, %c0_64, %c0_65] : memref<2x32x32xf32, #tpu.memory_space<vmem>>, vector<2x32x32xf32>
    tpu.vector_store %arg13[%c0_63, %c0_64, %c0_65], %160 {strides = array<i32>} : memref<2x32x32xf32, #tpu.memory_space<vmem>>, vector<2x32x32xf32>,
    return
  }
  func.func @transform_0(%arg0: i32, %arg1: i32, %arg2: memref<4xi32, #tpu.memory_space<smem>>) -> (i32, i32, i32, i32) {
    %c0_i32 = arith.constant 0 : i32
    %c0_i32_0 = arith.constant 0 : i32
    %c0_i32_1 = arith.constant 0 : i32
    return %arg0, %c0_i32, %arg1, %c0_i32_0 : i32, i32, i32, i32
  }
  func.func @transform_1(%arg0: i32, %arg1: i32, %arg2: memref<4xi32, #tpu.memory_space<smem>>) -> (i32, i32, i32, i32) {
    %c0_i32 = arith.constant 0 : i32
    %c0_i32_0 = arith.constant 0 : i32
    %c0_i32_1 = arith.constant 0 : i32
    return %arg0, %c0_i32, %arg1, %c0_i32_0 : i32, i32, i32, i32
  }
  func.func @transform_2(%arg0: i32, %arg1: i32, %arg2: memref<4xi32, #tpu.memory_space<smem>>) -> (i32, i32, i32) {
    %c0_i32 = arith.constant 0 : i32
    %c0_i32_0 = arith.constant 0 : i32
    return %arg0, %arg1, %c0_i32 : i32, i32, i32
  }
  func.func @transform_3(%arg0: i32, %arg1: i32, %arg2: memref<4xi32, #tpu.memory_space<smem>>) -> (i32, i32) {
    %c0_i32 = arith.constant 0 : i32
    %c0_i32_0 = arith.constant 0 : i32
    %c0_i32_1 = arith.constant 0 : i32
    return %c0_i32, %c0_i32_0 : i32, i32
  }
  func.func @transform_4(%arg0: i32, %arg1: i32, %arg2: memref<4xi32, #tpu.memory_space<smem>>) -> (i32, i32) {
    %c0_i32 = arith.constant 0 : i32
    %c0_i32_0 = arith.constant 0 : i32
    %c0_i32_1 = arith.constant 0 : i32
    return %c0_i32, %c0_i32_0 : i32, i32
  }
  func.func @transform_5(%arg0: i32, %arg1: i32, %arg2: memref<4xi32, #tpu.memory_space<smem>>) -> (i32, i32) {
    %c0_i32 = arith.constant 0 : i32
    %c0_i32_0 = arith.constant 0 : i32
    %c0_i32_1 = arith.constant 0 : i32
    return %c0_i32, %c0_i32_0 : i32, i32
  }
  func.func @transform_6(%arg0: i32, %arg1: i32, %arg2: memref<4xi32, #tpu.memory_space<smem>>) -> (i32, i32, i32) {
    %c0_i32 = arith.constant 0 : i32
    %c0_i32_0 = arith.constant 0 : i32
    %c0_i32_1 = arith.constant 0 : i32
    %c0_i32_2 = arith.constant 0 : i32
    return %c0_i32, %c0_i32_0, %c0_i32_1 : i32, i32, i32
  }
  func.func @transform_7(%arg0: i32, %arg1: i32, %arg2: memref<4xi32, #tpu.memory_space<smem>>) -> (i32, i32) {
    %c0_i32 = arith.constant 0 : i32
    %c0_i32_0 = arith.constant 0 : i32
    %c0_i32_1 = arith.constant 0 : i32
    return %c0_i32, %c0_i32_0 : i32, i32
  }
  func.func @transform_8(%arg0: i32, %arg1: i32, %arg2: memref<4xi32, #tpu.memory_space<smem>>) -> (i32, i32) {
    %c0_i32 = arith.constant 0 : i32
    %c0_i32_0 = arith.constant 0 : i32
    %c0_i32_1 = arith.constant 0 : i32
    return %c0_i32, %c0_i32_0 : i32, i32
  }
  func.func @transform_9(%arg0: i32, %arg1: i32, %arg2: memref<4xi32, #tpu.memory_space<smem>>) -> (i32, i32) {
    %c0_i32 = arith.constant 0 : i32
    %c0_i32_0 = arith.constant 0 : i32
    %c0_i32_1 = arith.constant 0 : i32
    return %c0_i32, %c0_i32_0 : i32, i32
  }
  func.func @transform_10(%arg0: i32, %arg1: i32, %arg2: memref<4xi32, #tpu.memory_space<smem>>) -> (i32, i32, i32) {
    %c0_i32 = arith.constant 0 : i32
    %c0_i32_0 = arith.constant 0 : i32
    return %arg0, %arg1, %c0_i32 : i32, i32, i32
  }
}

</mosaic_0001>

<bundles_post_ra>
// kernel: tpu_custom_call.1
= control target key start
LH: loop header
LB: loop body
LE: loop exit
PB: predicated region body
PF: predicated region fallthrough
CT: control target
= control target key end

     0   :  { %s4647_s0 = inlined_call_operand.vmem [shape: s32[4], index: 0, kind: input, shape index: {}]   ;;  %s4648_s1 = inlined_call_operand.vmem [shape: bf16[4,3,64,32], index: 1, kind: input, shape index: {}]   ;;  %s4649_s2 = inlined_call_operand.vmem [shape: bf16[4,3,64,32], index: 2, kind: input, shape index: {}]   ;;  %s4650_s3 = inlined_call_operand.vmem [shape: f32[4,64,32], index: 3, kind: input, shape index: {}]   ;;  %s4651_s4 = inlined_call_operand.vmem [shape: bf16[32,64], index: 4, kind: input, shape index: {}]   ;;  %s4652_s5 = inlined_call_operand.vmem [shape: f32[1,64], index: 5, kind: input, shape index: {}]   ;;  %s4653_s6 = inlined_call_operand.vmem [shape: bf16[32,32], index: 6, kind: input, shape index: {}]   ;;  %s4654_s7 = inlined_call_operand.vmem [shape: bf16[3,32,32], index: 7, kind: input, shape index: {}]   ;;  %s4655_s8 = inlined_call_operand.vmem [shape: f32[8,32], index: 8, kind: input, shape index: {}]   ;;  %s4656_s9 = inlined_call_operand.vmem [shape: f32[32,8], index: 9, kind: input, shape index: {}]   ;;  %s4657_s10 = inlined_call_operand.vmem [shape: f32[8,32], index: 10, kind: input, shape index: {}]   ;;  %s4658_s11 = inlined_call_operand.vmem [shape: f32[4,64,32], index: 11, kind: output, shape index: {}]  }
   0x1   :  { %s16_s19 = sshll.u32 %s4647_s0, 4  ;;  %s17_s19 = int_to_ptr.vmem [resolvable:$true] %s16_s19 }
   0x2   :  { %s3694_s20 = scalar_lea.vmem %s17_s19, 16  ;;  %p3699_p1 = scmp.lt.s32.totalorder %s17_s19, %s17_s19 }
   0x3   :  { %p3695_p0 = scmp.ne.s32.totalorder %s17_s19, %s3694_s20  ;;  %p3700_p2 = scmp.lt.s32.totalorder %s3694_s20, %s3694_s20 }
   0x5   :  { %p3701_p3 = por %p3700_p2, %p3699_p1 }
   0x7   :  { %p3702_p4 = pnand %p3701_p3, %p3695_p0 }
   0x9   :  { %3705 = shalt.err (!%p3702_p4)  }
   0xa   :  { %s3764_s21 = smov [#allocation3]  }
   0xb   :  { %19 = dma.vmem_to_smem %s17_s19, 16, %s3764_s21, [#allocation2] }
   0xc   :  { %3734 = dma.done.wait [#allocation2], 16 }
   0xd   :  { %3735 = vsyncadd [#allocation2], 4294967280 }
   0xe   :  { %21 = sfence }
   0xf   :  { %s3831_s22 = smov 0   ;;  %s3833_s23 = smov 0  }
  0x10   :  { %s3835_s24 = smov 0   ;;  %s3837_s0 = smov 0  }
  0x11   :  { %s3839_s25 = smov 0   ;;  %s3841_s26 = smov 0  }
  0x12   :  { %s3843_s27 = smov 0  }
  0x13 LB: > { %s36_s28 = sadd.s32 1, %s3754_s25  ;;  %s39_s29 = sadd.s32 1, %s3758_s26  ;;  %s3762_s27 = sphi %s3843_s27, %s27_s27   ;;  %s3758_s26 = sphi %s3841_s26, %s4672_s26   ;;  %s3754_s25 = sphi %s3839_s25, %s4671_s25   ;;  %s3750_s0 = sphi %s3837_s0, %s4670_s0   ;;  %s3746_s24 = sphi %s3835_s24, %s4669_s24   ;;  %s3742_s23 = sphi %s3833_s23, %s4668_s23   ;;  %s3738_s22 = sphi %s3831_s22, %s4667_s22  }
  0x14   : > { %p37_p5 = scmp.ge.s32.totalorder %s36_s28, 2  ;;  %s3049_s30 = sadd.s32 4294967295, %s3762_s27  }
  0x15   : > { %p55_p6 = scmp.ne.s32.totalorder %s3742_s23, %s3738_s22  ;;  %p56_p7 = scmp.eq.s32.totalorder %s3762_s27, 0 }
  0x16   : > { %s4674_s28 = smov (%p37_p5, %s36_s28), 0  ;;  %s4676_s29 = smov (!%p37_p5, %s39_s29), %s3758_s26 }
  0x17   : > { %4661 = sst [smem:[#allocation9_spill]] %s4674_s28  ;;  %p41_p8 = scmp.ge.s32.totalorder %s4676_s29, 2 }
  0x18   : > { %p290_p9 = scmp.eq.s32.totalorder %s3049_s30, 3  ;;  %s44_s12 = ssub.s32 %s3754_s25, %s4674_s28 }
  0x19   : > { %p3877_p10 = por %p56_p7, %p55_p6  ;;  %s4678_s29 = smov (%p41_p8, %s4676_s29), 0 }
  0x1a   : > { %4663 = sst [smem:[#allocation10_spill]] %s4678_s29  ;;  %p3883_p11 = por %p290_p9, %p55_p6 }
  0x1b   : > { %s43_s15 = ssub.s32 %s3758_s26, %s4678_s29  ;;  %s48_s17 = sadd.s32 1, %s3742_s23 }
  0x1c   : > { %s45_s16 = sor.u32 %s44_s12, %s43_s15  ;;  %p3052_p13 = scmp.ge.s32.totalorder %s3762_s27, 4 }
  0x1d   : > { %p46_p12 = scmp.eq.s32.totalorder %s45_s16, 0 }
  0x1e   : > { %333 = sbr.rel (%p3052_p13) target bundleno = 76 (0x4c), region = 44 }
  0x1f   : > { %s3891_s18 = scalar_select %p46_p12, %s3742_s23, %s48_s17  }
  0x25   : > { %336 = sbr.rel (!%p3877_p10) target bundleno = 51 (0x33), region = 48  ;;  %s338_s19 = sand.u32 (%p3877_p10), 1, %s3742_s23  }
  0x26   : > { %s3499_s20 = smul.u32 (%p3877_p10), 96, %s338_s19  ;;  %s3054_s21 = sshll.u32 (%p3877_p10), %s3754_s25, 2 }
  0x27   : > { %s3500_s30 = smul.u32 (%p3877_p10), 48, %s3758_s26 }
  0x28   : > { %s340_s17 = scalar_lea.vmem (%p3877_p10), [#allocation4], %s3499_s20 }
  0x29   : > { %s344_s28 = sadd.s32 (%p3877_p10), %s3500_s30, %s3054_s21 }
  0x2a   : > { %s3056_s29 = sshll.u32 (%p3877_p10), %s344_s28, 2 }
  0x2b   : > { %s346_s16 = scalar_lea.vmem (%p3877_p10), %s4648_s1, %s3056_s29 }
  0x2c   : > { %v362_v0 = vld [vmem:[%s346_s16] sm:$0xff]   ;;  %v366_v1 = vld [vmem:[%s346_s16 + $0x8] sm:$0xff]  }
  0x2d   : > { %v370_v2 = vld [vmem:[%s346_s16 + $0x20] sm:$0xff]   ;;  %363 = vst [vmem:[%s340_s17] sm:$0xff] %v362_v0   ;;  %367 = vst [vmem:[%s340_s17 + $0x8] sm:$0xff] %v366_v1   ;;  %v374_v3 = vld [vmem:[%s346_s16 + $0x28] sm:$0xff]  }
  0x2e   : > { %371 = vst [vmem:[%s340_s17 + $0x10] sm:$0xff] %v370_v2   ;;  %v378_v4 = vld [vmem:[%s346_s16 + $0x40] sm:$0xff]   ;;  %v382_v5 = vld [vmem:[%s346_s16 + $0x48] sm:$0xff]   ;;  %375 = vst [vmem:[%s340_s17 + $0x18] sm:$0xff] %v374_v3  }
  0x2f   : > { %379 = vst [vmem:[%s340_s17 + $0x20] sm:$0xff] %v378_v4   ;;  %383 = vst [vmem:[%s340_s17 + $0x28] sm:$0xff] %v382_v5   ;;  %v386_v6 = vld [vmem:[%s346_s16 + $0x60] sm:$0xff]   ;;  %v390_v7 = vld [vmem:[%s346_s16 + $0x68] sm:$0xff]  }
  0x30   : > { %v394_v8 = vld [vmem:[%s346_s16 + $0x80] sm:$0xff]   ;;  %387 = vst [vmem:[%s340_s17 + $0x30] sm:$0xff] %v386_v6   ;;  %391 = vst [vmem:[%s340_s17 + $0x38] sm:$0xff] %v390_v7   ;;  %v398_v9 = vld [vmem:[%s346_s16 + $0x88] sm:$0xff]  }
  0x31   : > { %395 = vst [vmem:[%s340_s17 + $0x40] sm:$0xff] %v394_v8   ;;  %v402_v10 = vld [vmem:[%s346_s16 + $0xa0] sm:$0xff]   ;;  %v406_v11 = vld [vmem:[%s346_s16 + $0xa8] sm:$0xff]   ;;  %399 = vst [vmem:[%s340_s17 + $0x48] sm:$0xff] %v398_v9  }
  0x32   : > { %403 = vst [vmem:[%s340_s17 + $0x50] sm:$0xff] %v402_v10   ;;  %407 = vst [vmem:[%s340_s17 + $0x58] sm:$0xff] %v406_v11  }
  0x33 PF: > { %480 = sbr.rel (!%p3877_p10) target bundleno = 65 (0x41), region = 89  ;;  %s482_s28 = sand.u32 (%p3877_p10), 1, %s3742_s23  }
  0x34   : > { %s3501_s29 = smul.u32 (%p3877_p10), 96, %s482_s28  ;;  %s3058_s19 = sshll.u32 (%p3877_p10), %s3754_s25, 2 }
  0x35   : > { %s3502_s20 = smul.u32 (%p3877_p10), 48, %s3758_s26 }
  0x36   : > { %s484_s17 = scalar_lea.vmem (%p3877_p10), [#allocation5], %s3501_s29 }
  0x37   : > { %s488_s21 = sadd.s32 (%p3877_p10), %s3502_s20, %s3058_s19 }
  0x38   : > { %s3060_s30 = sshll.u32 (%p3877_p10), %s488_s21, 2 }
  0x39   : > { %s490_s16 = scalar_lea.vmem (%p3877_p10), %s4649_s2, %s3060_s30 }
  0x3a   : > { %v506_v12 = vld [vmem:[%s490_s16] sm:$0xff]   ;;  %v510_v13 = vld [vmem:[%s490_s16 + $0x8] sm:$0xff]  }
  0x3b   : > { %v514_v14 = vld [vmem:[%s490_s16 + $0x20] sm:$0xff]   ;;  %507 = vst [vmem:[%s484_s17] sm:$0xff] %v506_v12   ;;  %511 = vst [vmem:[%s484_s17 + $0x8] sm:$0xff] %v510_v13   ;;  %v518_v15 = vld [vmem:[%s490_s16 + $0x28] sm:$0xff]  }
  0x3c   : > { %515 = vst [vmem:[%s484_s17 + $0x10] sm:$0xff] %v514_v14   ;;  %v522_v16 = vld [vmem:[%s490_s16 + $0x40] sm:$0xff]   ;;  %v526_v17 = vld [vmem:[%s490_s16 + $0x48] sm:$0xff]   ;;  %519 = vst [vmem:[%s484_s17 + $0x18] sm:$0xff] %v518_v15  }
  0x3d   : > { %523 = vst [vmem:[%s484_s17 + $0x20] sm:$0xff] %v522_v16   ;;  %527 = vst [vmem:[%s484_s17 + $0x28] sm:$0xff] %v526_v17   ;;  %v530_v18 = vld [vmem:[%s490_s16 + $0x60] sm:$0xff]   ;;  %v534_v19 = vld [vmem:[%s490_s16 + $0x68] sm:$0xff]  }
  0x3e   : > { %v538_v20 = vld [vmem:[%s490_s16 + $0x80] sm:$0xff]   ;;  %531 = vst [vmem:[%s484_s17 + $0x30] sm:$0xff] %v530_v18   ;;  %535 = vst [vmem:[%s484_s17 + $0x38] sm:$0xff] %v534_v19   ;;  %v542_v21 = vld [vmem:[%s490_s16 + $0x88] sm:$0xff]  }
  0x3f   : > { %539 = vst [vmem:[%s484_s17 + $0x40] sm:$0xff] %v538_v20   ;;  %v546_v22 = vld [vmem:[%s490_s16 + $0xa0] sm:$0xff]   ;;  %v550_v23 = vld [vmem:[%s490_s16 + $0xa8] sm:$0xff]   ;;  %543 = vst [vmem:[%s484_s17 + $0x48] sm:$0xff] %v542_v21  }
  0x40   : > { %547 = vst [vmem:[%s484_s17 + $0x50] sm:$0xff] %v546_v22   ;;  %551 = vst [vmem:[%s484_s17 + $0x58] sm:$0xff] %v550_v23  }
  0x41 PF: > { %624 = sbr.rel (!%p3877_p10) target bundleno = 76 (0x4c), region = 130  ;;  %s626_s28 = sand.u32 (%p3877_p10), 1, %s3742_s23  }
  0x42   : > { %s3063_s29 = sshll.u32 (%p3877_p10), %s3754_s25, 2  ;;  %s3061_s19 = sshll.u32 (%p3877_p10), %s626_s28, 6 }
  0x43   : > { %s3212_s20 = sshll.u32 (%p3877_p10), %s3758_s26, 4  ;;  %s628_s17 = scalar_lea.vmem (%p3877_p10), [#allocation6], %s3061_s19 }
  0x44   : > { %s632_s21 = sadd.s32 (%p3877_p10), %s3212_s20, %s3063_s29 }
  0x45   : > { %s3065_s30 = sshll.u32 (%p3877_p10), %s632_s21, 3 }
  0x46   : > { %s634_s16 = scalar_lea.vmem (%p3877_p10), %s4650_s3, %s3065_s30 }
  0x47   : > { %v676_v24 = vld [vmem:[%s634_s16] sm:$0xff] (%p3877_p10)  ;;  %v678_v25 = vld [vmem:[%s634_s16 + $0x8] sm:$0xff] (%p3877_p10)  ;;  %v680_v26 = vld [vmem:[%s634_s16 + $0x10] sm:$0xff] (%p3877_p10) }
  0x48   : > { %677 = vst [vmem:[%s628_s17] sm:$0xff] %v676_v24  ;;  %679 = vst [vmem:[%s628_s17 + $0x8] sm:$0xff] %v678_v25  ;;  %v682_v27 = vld [vmem:[%s634_s16 + $0x18] sm:$0xff]  ;;  %v684_v28 = vld [vmem:[%s634_s16 + $0x40] sm:$0xff] }
  0x49   : > { %681 = vst [vmem:[%s628_s17 + $0x10] sm:$0xff] %v680_v26  ;;  %v686_v29 = vld [vmem:[%s634_s16 + $0x48] sm:$0xff]  ;;  %683 = vst [vmem:[%s628_s17 + $0x18] sm:$0xff] %v682_v27  ;;  %v688_v30 = vld [vmem:[%s634_s16 + $0x50] sm:$0xff] }
  0x4a   : > { %685 = vst [vmem:[%s628_s17 + $0x20] sm:$0xff] %v684_v28  ;;  %687 = vst [vmem:[%s628_s17 + $0x28] sm:$0xff] %v686_v29  ;;  %v690_v31 = vld [vmem:[%s634_s16 + $0x58] sm:$0xff] }
  0x4b   : > { %689 = vst [vmem:[%s628_s17 + $0x30] sm:$0xff] %v688_v30  ;;  %691 = vst [vmem:[%s628_s17 + $0x38] sm:$0xff] %v690_v31 }
  0x4c PF: > { %p3066_p0 = scmp.ge.s32.totalorder %s3762_s27, 1  ;;  %p696_p1 = scmp.lt.s32.totalorder %s3762_s27, 5 }
  0x4e   : > { %p697_p2 = pnand %p3066_p0, %p696_p1 }
  0x4f   : > { %v3564_v32 = vld [vmem:[%s4651_s4] sm:$0xff] (!%p697_p2)   ;;  %s703_s29 = sand.u32 (!%p697_p2), 1, %s3738_s22   ;;  %v3565_v33 = vld [vmem:[%s4651_s4 + $0x8] sm:$0xff] (!%p697_p2)   ;;  %vm901_vm0 = vcmask (!%p697_p2), 261120   ;;  %s3765_s17 = smov (!%p697_p2), 32   ;;  %vm1720_vm3 = vcmask (!%p697_p2), 64512  }
  0x50   : > { %700 = sbr.rel (%p697_p2) target bundleno = 2389 (0x955), region = 168  ;;  %3313 = vmatprep.subr.bf16.mxu0 (!%p697_p2), %v3564_v32  ;;  %3495 = vmatprep.subr.bf16.mxu1 (!%p697_p2), %v3564_v32  ;;  %v3069_v46 = vld [vmem:[%s4652_s5] ss:$0 sm:$0xff] (!%p697_p2)  ;;  %s3147_s15 = sshll.u32 (!%p697_p2), %s3750_s0, 1 }
  0x51   : > { %s3503_s21 = smul.u32 (!%p697_p2), 96, %s703_s29  ;;  %3314 = vmatpush3.bf16.msra.mxu0 (!%p697_p2), %v3564_v32  ;;  %3497 = vmatpush3.bf16.msra.mxu1 (!%p697_p2), %v3564_v32  ;;  %v1369_v31 = vld [vmem:[%s4656_s9] sm:$0xff] (!%p697_p2)  ;;  %v1370_v32 = vld [vmem:[%s4656_s9 + $0x8] sm:$0xff] (!%p697_p2)  ;;  %s1679_s16 = sld [smem:[#allocation3 + %s3147_s15]] (!%p697_p2) }
  0x52   : > { %3315 = vmatprep.subr.bf16.mxu0 (!%p697_p2), %v3565_v33  ;;  %3496 = vmatprep.subr.bf16.mxu1 (!%p697_p2), %v3565_v33 }
  0x53   : > { %s705_s30 = scalar_lea.vmem (!%p697_p2), [#allocation4], %s3503_s21  ;;  %s3933_s12 = scalar_lea.vmem (!%p697_p2), [#allocation5], %s3503_s21 }
  0x54   : > { %v3566_v34 = vld [vmem:[%s705_s30] sm:$0xff] (!%p697_p2)   ;;  %v3567_v35 = vld [vmem:[%s705_s30 + $0x8] sm:$0xff] (!%p697_p2)   ;;  %v3568_v36 = vld [vmem:[%s705_s30 + $0x10] sm:$0xff] (!%p697_p2)  }
  0x55   : > { %3317 = vmatprep.mubr.msk.bf16.mxu0 (!%p697_p2), %vm901_vm0, %v3566_v34  ;;  %3316 = vmatpush3.bf16.msra.mxu0 (!%p697_p2), %v3565_v33  ;;  %v3569_v37 = vld [vmem:[%s705_s30 + $0x18] sm:$0xff] (!%p697_p2)   ;;  %v3575_v38 = vld [vmem:[%s705_s30 + $0x50] sm:$0xff] (!%p697_p2)   ;;  %v3570_v39 = vld [vmem:[%s705_s30 + $0x20] sm:$0xff] (!%p697_p2)   ;;  %v3487_v34 = vpack.c.bf16 (!%p697_p2), %v1370_v32, %v1369_v31 }
  0x56   : > { %3498 = vmatpush3.bf16.msra.mxu1 (!%p697_p2), %v3565_v33  ;;  %3337 = vmatprep.mubr.msk.bf16.mxu1 (!%p697_p2), %vm901_vm0, %v3575_v38  ;;  %v3577_v40 = vld [vmem:[%s705_s30 + $0x58] sm:$0xff] (!%p697_p2)   ;;  %v3571_v41 = vld [vmem:[%s705_s30 + $0x28] sm:$0xff] (!%p697_p2)   ;;  %v3572_v42 = vld [vmem:[%s705_s30 + $0x30] sm:$0xff] (!%p697_p2)  }
  0x57   : > { %v3573_v43 = vld [vmem:[%s705_s30 + $0x38] sm:$0xff]   ;;  %v3574_v44 = vld [vmem:[%s705_s30 + $0x40] sm:$0xff]   ;;  %v3576_v45 = vld [vmem:[%s705_s30 + $0x48] sm:$0xff]   ;;  %3488 = vmatprep.subr.bf16.mxu0 %v3487_v34 }
  0x58   : > { %3318 = vmatmul.mubr.msk.bf16.vlgmr.msra.gmra.mrb[0].mxu0 %vm901_vm0, %v3567_v35  ;;  %v1371_v33 = vld [vmem:[%s4656_s9 + $0x10] sm:$0xff]  ;;  %v1372_v35 = vld [vmem:[%s4656_s9 + $0x18] sm:$0xff]  ;;  %v3580_v31 = vld [vmem:[%s3933_s12] sm:$0xff]  }
  0x59   : > { %3321 = vmatprep.mubr.msk.bf16.mxu0 %vm901_vm0, %v3568_v36  ;;  %3338 = vmatmul.mubr.msk.bf16.vlgmr.msra.gmra.mrb[0].mxu1 %vm901_vm0, %v3577_v40  ;;  %v3491_v36 = vpack.c.bf16 %v1372_v35, %v1371_v33  ;;  %v3581_v32 = vld [vmem:[%s3933_s12 + $0x8] sm:$0xff]   ;;  %v1929_v33 = vld [vmem:[%s4657_s10] sm:$0xff]  ;;  %v3583_v35 = vld [vmem:[%s3933_s12 + $0x18] sm:$0xff]  }
  0x5a   : > { %3490 = vmatpush3.bf16.msra.mxu0 %v3487_v34  ;;  %3345 = vmatprep.mubr.msk.bf16.mxu1 %vm901_vm0, %v3580_v31  ;;  %v3582_v34 = vld [vmem:[%s3933_s12 + $0x10] sm:$0xff]  }
  0x5b   : > { %3492 = vmatprep.subr.bf16.mxu0 %v3491_v36 }
  0x5e   : > { %3494 = vmatpush3.bf16.msra.mxu0 %v3491_v36  ;;  %v3584_v36 = vld [vmem:[%s3933_s12 + $0x20] sm:$0xff]  }
  0x60   : > { %3322 = vmatmul.mubr.msk.bf16.gmra.mrb[4].mxu0 %vm901_vm0, %v3569_v37 }
  0x61   : > { %3325 = vmatprep.mubr.msk.bf16.mxu0 %vm901_vm0, %v3570_v39 }
  0x68   : > { %3326 = vmatmul.mubr.msk.bf16.gmra.mrb[8].mxu0 %vm901_vm0, %v3571_v41 }
  0x69   : > { %3329 = vmatprep.mubr.msk.bf16.mxu0 %vm901_vm0, %v3572_v42 }
  0x70   : > { %3330 = vmatmul.mubr.msk.bf16.gmra.mrb[12].mxu0 %vm901_vm0, %v3573_v43 }
  0x71   : > { %3333 = vmatprep.mubr.msk.bf16.mxu0 %vm901_vm0, %v3574_v44 }
  0x78   : > { %3334 = vmatmul.mubr.msk.bf16.gmra.mrb[16].mxu0 %vm901_vm0, %v3576_v45 }
 0x12b   : > { %v3319_v47 = vpop.f32.mrb[0].mxu0 }
 0x12c   : > { %v3946_v48 = vadd.f32 %v3319_v47, %v3069_v46  ;;  %v972_v49 = vpop.f32.mrb[1].mxu0  ;;  %v3339_v58 = vpop.f32.mrb[0].mxu1 }
 0x12d   : > { %v3948_v50 = vadd.f32 %v3069_v46, %v972_v49  ;;  %v3320_v51 = vpop.f32.mrb[2].mxu0  ;;  %v3964_v61 = vadd.f32 %v3339_v58, %v3069_v46  ;;  %v1052_v62 = vpop.f32.mrb[1].mxu1 }
 0x12e   : > { %1325 = vrot.lane.b32.xlu1 %v3946_v48, %s3765_s17  ;;  %v975_v52 = vpop.f32.mrb[3].mxu0  ;;  %v3954_v53 = vadd.f32 %v3320_v51, %v3069_v46  ;;  %v3968_v1 = vadd.f32 %v3069_v46, %v1052_v62  ;;  %v3340_v2 = vpop.f32.mrb[2].mxu1 }
 0x12f   : > { %1321 = vrot.lane.b32.xlu0 %v3948_v50, %s3765_s17  ;;  %v3956_v54 = vadd.f32 %v3069_v46, %v975_v52  ;;  %v3970_v4 = vadd.f32 %v3340_v2, %v3069_v46  ;;  %v1055_v5 = vpop.f32.mrb[3].mxu1 }
 0x130   : > { %v3972_v6 = vadd.f32 %v3069_v46, %v1055_v5 }
 0x132   : > { %1327 = vrot.lane.b32.xlu1 %v3954_v53, %s3765_s17 }
 0x133   : > { %v3323_v55 = vpop.f32.mrb[4].mxu0  ;;  %1323 = vrot.lane.b32.xlu0 %v3956_v54, %s3765_s17 }
 0x134   : > { %v3962_v56 = vadd.f32 %v3323_v55, %v3069_v46  ;;  %v988_v57 = vpop.f32.mrb[5].mxu0 }
 0x135   : > { %v989_v59 = vadd.f32 %v3069_v46, %v988_v57  ;;  %v3324_v60 = vpop.f32.mrb[6].mxu0 }
 0x136   : > { %v3966_v63 = vadd.f32 %v3324_v60, %v3069_v46  ;;  %v991_v0 = vpop.f32.mrb[7].mxu0 }
 0x137   : > { %v992_v3 = vadd.f32 %v3069_v46, %v991_v0 }
 0x13b   : > { %v3327_v7 = vpop.f32.mrb[8].mxu0 }
 0x13c   : > { %v1013_v8 = vadd.f32 %v3327_v7, %v3069_v46  ;;  %v1004_v9 = vpop.f32.mrb[9].mxu0 }
 0x13d   : > { %v1005_v10 = vadd.f32 %v3069_v46, %v1004_v9  ;;  %v3328_v11 = vpop.f32.mrb[10].mxu0 }
 0x13e   : > { %v1016_v12 = vadd.f32 %v3328_v11, %v3069_v46  ;;  %v1007_v13 = vpop.f32.mrb[11].mxu0 }
 0x13f   : > { %v1008_v14 = vadd.f32 %v3069_v46, %v1007_v13 }
 0x143   : > { %v3331_v15 = vpop.f32.mrb[12].mxu0 }
 0x144   : > { %v1020_v16 = vpop.f32.mrb[13].mxu0  ;;  %v1029_v21 = vadd.f32 %v3331_v15, %v3069_v46 }
 0x145   : > { %v1021_v17 = vadd.f32 %v3069_v46, %v1020_v16  ;;  %v3332_v18 = vpop.f32.mrb[14].mxu0 }
 0x146   : > { %v1023_v19 = vpop.f32.mrb[15].mxu0  ;;  %v1032_v22 = vadd.f32 %v3332_v18, %v3069_v46 }
 0x147   : > { %v1024_v20 = vadd.f32 %v3069_v46, %v1023_v19  ;;  %1329 = vrot.lane.b32.xlu0 %v1021_v17, %s3765_s17 }
 0x149   : > { %1331 = vrot.lane.b32.xlu1 %v1024_v20, %s3765_s17 }
 0x14b   : > { %1333 = vrot.lane.b32.xlu0 %v1029_v21, %s3765_s17  ;;  %v3335_v23 = vpop.f32.mrb[16].mxu0 }
 0x14c   : > { %v1045_v24 = vadd.f32 %v3335_v23, %v3069_v46  ;;  %v1036_v25 = vpop.f32.mrb[17].mxu0 }
 0x14d   : > { %1335 = vrot.lane.b32.xlu1 %v1032_v22, %s3765_s17  ;;  %v1037_v26 = vadd.f32 %v3069_v46, %v1036_v25  ;;  %v3336_v27 = vpop.f32.mrb[18].mxu0  ;;  %s3766_s17 = smov 96  }
 0x14e   : > { %v1048_v28 = vadd.f32 %v3336_v27, %v3069_v46  ;;  %v1039_v29 = vpop.f32.mrb[19].mxu0 }
 0x14f   : > { %v1040_v30 = vadd.f32 %v3069_v46, %v1039_v29  ;;  %v3578_v29 = vld [vmem:[%s4653_s6] sm:$0xff]  }
 0x150   : > { %3341 = vmatprep.subr.bf16.mxu1 %v3578_v29 }
 0x151   : > { %3342 = vmatpush3.bf16.msra.mxu1 %v3578_v29 }
 0x1a0   : > { %v1326_v37 = vpop.permute.xlu1 %1325 }
 0x1a1   : > { %v1322_v38 = vpop.permute.xlu0 %1321  ;;  %v1347_v41 = vmul.f32 %v1326_v37, %v3946_v48  ;;  %v1351_v46 = vmul.f32 %v1326_v37, %v3962_v56 }
 0x1a2   : > { %v1345_v39 = vmul.f32 %v1322_v38, %v3948_v50  ;;  %v1349_v44 = vmul.f32 %v1322_v38, %v989_v59  ;;  %v1353_v48 = vmul.f32 %v1322_v38, %v1005_v10  ;;  %v1355_v50 = vmul.f32 %v1326_v37, %v1013_v8  ;;  %v3585_v37 = vld [vmem:[%s3933_s12 + $0x28] sm:$0xff]   ;;  %v3586_v38 = vld [vmem:[%s3933_s12 + $0x30] sm:$0xff]  }
 0x1a4   : > { %1397 = vrot.lane.b32.xlu0 %v1345_v39, %s3766_s17  ;;  %v1328_v43 = vpop.permute.xlu1 %1327  ;;  %v3587_v39 = vld [vmem:[%s3933_s12 + $0x38] sm:$0xff]  }
 0x1a5   : > { %v1324_v40 = vpop.permute.xlu0 %1323  ;;  %v1348_v45 = vmul.f32 %v1328_v43, %v3954_v53  ;;  %v1352_v49 = vmul.f32 %v1328_v43, %v3966_v63  ;;  %v1356_v53 = vmul.f32 %v1328_v43, %v1016_v12  ;;  %v3591_v43 = vld [vmem:[%s3933_s12 + $0x58] sm:$0xff]  }
 0x1a6   : > { %v1346_v42 = vmul.f32 %v1324_v40, %v3956_v54  ;;  %v1350_v47 = vmul.f32 %v1324_v40, %v992_v3  ;;  %v1354_v51 = vmul.f32 %v1324_v40, %v1008_v14  ;;  %v3588_v40 = vld [vmem:[%s3933_s12 + $0x40] sm:$0xff]  }
 0x1a8   : > { %1401 = vrot.lane.b32.xlu0 %v1347_v41, %s3766_s17  ;;  %1399 = vrot.lane.b32.xlu1 %v1346_v42, %s3766_s17  ;;  %v3589_v41 = vld [vmem:[%s3933_s12 + $0x48] sm:$0xff]   ;;  %v3590_v42 = vld [vmem:[%s3933_s12 + $0x50] sm:$0xff]   ;;  %s1687_s12 = sadd.s32 1, %s3147_s15  ;;  %s4394_s15 = sshll.u32 %s703_s29, 6 }
 0x1ac   : > { %1405 = vrot.lane.b32.xlu0 %v1349_v44, %s3766_s17  ;;  %1403 = vrot.lane.b32.xlu1 %v1348_v45, %s3766_s17  ;;  %v1680_v44 = vstv %s1679_s16 }
 0x1ad   : > { %vm1681_vm1 = vcmp.le.s32.totalorder %v1680_v44, 0  ;;  %vm1682_vm2 = vcmp.le.s32.totalorder %v1680_v44, 1  ;;  %vm1683_vm4 = vcmp.le.s32.totalorder %v1680_v44, 2 }
 0x1b0   : > { %1409 = vrot.lane.b32.xlu0 %v1351_v46, %s3766_s17  ;;  %1407 = vrot.lane.b32.xlu1 %v1350_v47, %s3766_s17  ;;  %v3767_v47 = vmov 0.0  }
 0x1b4   : > { %1413 = vrot.lane.b32.xlu0 %v1353_v48, %s3766_s17  ;;  %1411 = vrot.lane.b32.xlu1 %v1352_v49, %s3766_s17  ;;  %v1684_v48 = vsel %vm1681_vm1, -1e+09, %v3767_v47 }
 0x1b8   : > { %1417 = vrot.lane.b32.xlu0 %v1355_v50, %s3766_s17  ;;  %1415 = vrot.lane.b32.xlu1 %v1354_v51, %s3766_s17  ;;  %v1685_v51 = vsel %vm1682_vm2, -1e+09, %v3767_v47 }
 0x1b9   : > { %v1330_v52 = vpop.permute.xlu0 %1329 }
 0x1ba   : > { %v1357_v54 = vmul.f32 %v1330_v52, %v1021_v17  ;;  %v1361_v60 = vmul.f32 %v1330_v52, %v1037_v26  ;;  %v1365_v2 = vmul.f32 %v1330_v52, %v3968_v1 }
 0x1bb   : > { %v1332_v55 = vpop.permute.xlu1 %1331 }
 0x1bc   : > { %1419 = vrot.lane.b32.xlu1 %v1356_v53, %s3766_s17  ;;  %1421 = vrot.lane.b32.xlu0 %v1357_v54, %s3766_s17  ;;  %v1358_v57 = vmul.f32 %v1332_v55, %v1024_v20  ;;  %v1362_v63 = vmul.f32 %v1332_v55, %v1040_v30  ;;  %v1366_v5 = vmul.f32 %v1332_v55, %v3972_v6  ;;  %v3579_v30 = vld [vmem:[%s4653_s6 + $0x8] sm:$0xff]  }
 0x1bd   : > { %v1334_v56 = vpop.permute.xlu0 %1333  ;;  %3343 = vmatprep.subr.bf16.mxu1 %v3579_v30 }
 0x1be   : > { %v1359_v58 = vmul.f32 %v1334_v56, %v1029_v21  ;;  %v1363_v0 = vmul.f32 %v1334_v56, %v1045_v24  ;;  %v1367_v7 = vmul.f32 %v1334_v56, %v3964_v61  ;;  %3344 = vmatpush3.bf16.msra.mxu1 %v3579_v30 }
 0x1bf   : > { %v1336_v59 = vpop.permute.xlu1 %1335  ;;  %3413 = vmatprep.subr.mxu1 %v1929_v33 }
 0x1c0   : > { %1423 = vrot.lane.b32.xlu1 %v1358_v57, %s3766_s17  ;;  %1425 = vrot.lane.b32.xlu0 %v1359_v58, %s3766_s17  ;;  %v1360_v62 = vmul.f32 %v1336_v59, %v1032_v22  ;;  %v1364_v3 = vmul.f32 %v1336_v59, %v1048_v28  ;;  %v1368_v8 = vmul.f32 %v1336_v59, %v3970_v4 }
 0x1c1   : > { %3346 = vmatmul.mubr.msk.bf16.vlgmr.msra.gmra.mrb[4].mxu1 %vm901_vm0, %v3581_v32 }
 0x1c2   : > { %3414 = vmatpush3.msra.mxu1 %v1929_v33  ;;  %3349 = vmatprep.mubr.msk.bf16.mxu1 %vm901_vm0, %v3582_v34 }
 0x1c4   : > { %1427 = vrot.lane.b32.xlu1 %v1360_v62, %s3766_s17  ;;  %1429 = vrot.lane.b32.xlu0 %v1361_v60, %s3766_s17 }
 0x1c8   : > { %1431 = vrot.lane.b32.xlu1 %v1362_v63, %s3766_s17  ;;  %1433 = vrot.lane.b32.xlu0 %v1363_v0, %s3766_s17 }
 0x1c9   : > { %3350 = vmatmul.mubr.msk.bf16.gmra.mrb[8].mxu1 %vm901_vm0, %v3583_v35 }
 0x1ca   : > { %3353 = vmatprep.mubr.msk.bf16.mxu1 %vm901_vm0, %v3584_v36 }
 0x1cc   : > { %1435 = vrot.lane.b32.xlu1 %v1364_v3, %s3766_s17  ;;  %1437 = vrot.lane.b32.xlu0 %v1365_v2, %s3766_s17 }
 0x1d0   : > { %1439 = vrot.lane.b32.xlu1 %v1366_v5, %s3766_s17  ;;  %1441 = vrot.lane.b32.xlu0 %v1367_v7, %s3766_s17 }
 0x1d1   : > { %3354 = vmatmul.mubr.msk.bf16.gmra.mrb[12].mxu1 %vm901_vm0, %v3585_v37 }
 0x1d2   : > { %3357 = vmatprep.mubr.msk.bf16.mxu1 %vm901_vm0, %v3586_v38 }
 0x1d4   : > { %1443 = vrot.lane.b32.xlu1 %v1368_v8, %s3766_s17  ;;  %s1688_s17 = sld [smem:[#allocation3 + %s1687_s12]]  ;;  %s4588_s12 = scalar_lea.vmem [#allocation7], %s4394_s15 }
 0x1d9   : > { %3358 = vmatmul.mubr.msk.bf16.gmra.mrb[16].mxu1 %vm901_vm0, %v3587_v39 }
 0x1da   : > { %3361 = vmatprep.mubr.msk.bf16.mxu1 %vm901_vm0, %v3588_v40 }
 0x1e1   : > { %3362 = vmatmul.mubr.msk.bf16.gmra.mrb[20].mxu1 %vm901_vm0, %v3589_v41 }
 0x1e2   : > { %3365 = vmatprep.mubr.msk.bf16.mxu1 %vm901_vm0, %v3590_v42 }
 0x1e9   : > { %3366 = vmatmul.mubr.msk.bf16.gmra.mrb[24].mxu1 %vm901_vm0, %v3591_v43 }
 0x216   : > { %v1398_v9 = vpop.permute.xlu0 %1397 }
 0x217   : > { %3377 = vmatprep.mubr.msk.f32.mxu0 %vm901_vm0, %v1398_v9 }
 0x21a   : > { %v1400_v1 = vpop.permute.xlu1 %1399  ;;  %v1402_v10 = vpop.permute.xlu0 %1401 }
 0x21b   : > { %3378 = vmatmul.mubr.msk.f32.vlgmr.msra.gmra.mrb[20].mxu0 %vm901_vm0, %v1400_v1  ;;  %v1686_v1 = vsel %vm1683_vm4, -1e+09, %v3767_v47 }
 0x21c   : > { %3380 = vmatprep.mubr.msk.f32.mxu0 %vm901_vm0, %v1402_v10 }
 0x21e   : > { %v1404_v6 = vpop.permute.xlu1 %1403  ;;  %v1406_v11 = vpop.permute.xlu0 %1405 }
 0x21f   : > { %3381 = vmatmul.mubr.msk.f32.gmra.mrb[22].mxu0 %vm901_vm0, %v1404_v6 }
 0x220   : > { %3383 = vmatprep.mubr.msk.f32.mxu0 %vm901_vm0, %v1406_v11 }
 0x222   : > { %v1408_v61 = vpop.permute.xlu1 %1407  ;;  %v1410_v12 = vpop.permute.xlu0 %1409 }
 0x223   : > { %3384 = vmatmul.mubr.msk.f32.gmra.mrb[24].mxu0 %vm901_vm0, %v1408_v61 }
 0x224   : > { %3386 = vmatprep.mubr.msk.f32.mxu0 %vm901_vm0, %v1410_v12 }
 0x226   : > { %v1412_v4 = vpop.permute.xlu1 %1411  ;;  %v1414_v13 = vpop.permute.xlu0 %1413 }
 0x227   : > { %3387 = vmatmul.mubr.msk.f32.gmra.mrb[26].mxu0 %vm901_vm0, %v1412_v4 }
 0x228   : > { %3389 = vmatprep.mubr.msk.f32.mxu0 %vm901_vm0, %v1414_v13 }
 0x22a   : > { %v1416_v14 = vpop.permute.xlu1 %1415  ;;  %v1418_v15 = vpop.permute.xlu0 %1417 }
 0x22b   : > { %3390 = vmatmul.mubr.msk.f32.gmra.mrb[28].mxu0 %vm901_vm0, %v1416_v14 }
 0x22c   : > { %3392 = vmatprep.mubr.msk.f32.mxu0 %vm901_vm0, %v1418_v15 }
 0x22e   : > { %v1420_v16 = vpop.permute.xlu1 %1419  ;;  %v1422_v17 = vpop.permute.xlu0 %1421 }
 0x22f   : > { %3393 = vmatmul.mubr.msk.f32.gmra.mrb[30].mxu0 %vm901_vm0, %v1420_v16 }
 0x230   : > { %3395 = vmatprep.mubr.msk.f32.mxu0 %vm901_vm0, %v1422_v17 }
 0x232   : > { %v1424_v18 = vpop.permute.xlu1 %1423  ;;  %v1426_v19 = vpop.permute.xlu0 %1425 }
 0x233   : > { %3396 = vmatmul.mubr.msk.f32.gmra.mrb[32].mxu0 %vm901_vm0, %v1424_v18  ;;  %v3592_v18 = vld [vmem:[%s4654_s7] sm:$0xff]  }
 0x234   : > { %3398 = vmatprep.mubr.msk.f32.mxu0 %vm901_vm0, %v1426_v19  ;;  %3451 = vmatprep.subr.bf16.mxu0 %v3592_v18 }
 0x235   : > { %3452 = vmatpush3.bf16.msra.mxu0 %v3592_v18 }
 0x236   : > { %v1428_v20 = vpop.permute.xlu1 %1427  ;;  %v1430_v21 = vpop.permute.xlu0 %1429 }
 0x237   : > { %3399 = vmatmul.mubr.msk.f32.gmra.mrb[34].mxu0 %vm901_vm0, %v1428_v20 }
 0x238   : > { %3401 = vmatprep.mubr.msk.f32.mxu0 %vm901_vm0, %v1430_v21 }
 0x23a   : > { %v1432_v22 = vpop.permute.xlu1 %1431  ;;  %v1434_v23 = vpop.permute.xlu0 %1433 }
 0x23b   : > { %3402 = vmatmul.mubr.msk.f32.gmra.mrb[36].mxu0 %vm901_vm0, %v1432_v22 }
 0x23c   : > { %3404 = vmatprep.mubr.msk.f32.mxu0 %vm901_vm0, %v1434_v23 }
 0x23e   : > { %v1436_v24 = vpop.permute.xlu1 %1435  ;;  %v1438_v25 = vpop.permute.xlu0 %1437 }
 0x23f   : > { %3405 = vmatmul.mubr.msk.f32.gmra.mrb[38].mxu0 %vm901_vm0, %v1436_v24 }
 0x240   : > { %3407 = vmatprep.mubr.msk.f32.mxu0 %vm901_vm0, %v1438_v25  ;;  %v4104_v25 = vstv %s1688_s17  ;;  %s4400_s17 = scalar_lea.vmem [#allocation6], %s4394_s15  ;;  %s3207_s15 = sshll.u32 (%p3883_p11), %s3746_s24, 2 }
 0x241   : > { %vm1690_vm5 = vcmp.le.s32.totalorder %v4104_v25, 0  ;;  %vm1691_vm6 = vcmp.le.s32.totalorder %v4104_v25, 1  ;;  %vm1692_vm7 = vcmp.le.s32.totalorder %v4104_v25, 2 }
 0x242   : > { %v1440_v26 = vpop.permute.xlu1 %1439  ;;  %v1442_v27 = vpop.permute.xlu0 %1441 }
 0x243   : > { %3408 = vmatmul.mubr.msk.f32.gmra.mrb[40].mxu0 %vm901_vm0, %v1440_v26 }
 0x244   : > { %3410 = vmatprep.mubr.msk.f32.mxu0 %vm901_vm0, %v1442_v27 }
 0x246   : > { %v1444_v28 = vpop.permute.xlu1 %1443 }
 0x247   : > { %3411 = vmatmul.mubr.msk.f32.gmra.mrb[42].mxu0 %vm901_vm0, %v1444_v28 }
 0x2ee   : > { %v3379_v45 = vpop.f32.mrb[20].mxu0 }
 0x2ef   : > { %v1559_v46 = vpop.f32.mrb[21].mxu0  ;;  %v1697_v52 = vadd.f32 %v3379_v45, %v1684_v48 }
 0x2f0   : > { %v1696_v53 = vadd.f32 %v1684_v48, %v1559_v46 }
 0x2f1   : > { %v1726_v58 = vsel %vm1720_vm3, %v1697_v52, -inf }
 0x2f2   : > { %v3382_v49 = vpop.f32.mrb[22].mxu0  ;;  %v1721_v62 = vsel %vm1720_vm3, %v1696_v53, -inf }
 0x2f3   : > { %v1569_v50 = vpop.f32.mrb[23].mxu0  ;;  %v1699_v59 = vadd.f32 %v3382_v49, %v1684_v48 }
 0x2f4   : > { %v4087_v63 = vadd.f32 %v1684_v48, %v1569_v50 }
 0x2f5   : > { %v1736_v10 = vsel %vm1720_vm3, %v1699_v59, -inf }
 0x2f6   : > { %v3385_v54 = vpop.f32.mrb[24].mxu0  ;;  %v1731_v11 = vsel %vm1720_vm3, %v4087_v63, -inf }
 0x2f7   : > { %v1701_v55 = vadd.f32 %v3385_v54, %v1685_v51  ;;  %v1579_v56 = vpop.f32.mrb[25].mxu0 }
 0x2f8   : > { %v1700_v57 = vadd.f32 %v1685_v51, %v1579_v56 }
 0x2f9   : > { %v1727_v60 = vsel %vm1720_vm3, %v1701_v55, -inf }
 0x2fa   : > { %v1728_v0 = vmax.f32 %v1726_v58, %v1727_v60  ;;  %v1722_v2 = vsel %vm1720_vm3, %v1700_v57, -inf  ;;  %v3388_v3 = vpop.f32.mrb[26].mxu0 }
 0x2fb   : > { %v1723_v5 = vmax.f32 %v1721_v62, %v1722_v2  ;;  %v1703_v7 = vadd.f32 %v3388_v3, %v1685_v51  ;;  %v1589_v8 = vpop.f32.mrb[27].mxu0 }
 0x2fc   : > { %v4090_v9 = vadd.f32 %v1685_v51, %v1589_v8  ;;  %v1693_v51 = vsel %vm1690_vm5, -1e+09, %v3767_v47 }
 0x2fd   : > { %v1737_v6 = vsel %vm1720_vm3, %v1703_v7, -inf }
 0x2fe   : > { %v1738_v61 = vmax.f32 %v1736_v10, %v1737_v6  ;;  %v1732_v12 = vsel %vm1720_vm3, %v4090_v9, -inf  ;;  %v3391_v4 = vpop.f32.mrb[28].mxu0 }
 0x2ff   : > { %v1733_v13 = vmax.f32 %v1731_v11, %v1732_v12  ;;  %v1705_v14 = vadd.f32 %v3391_v4, %v1686_v1  ;;  %v1599_v15 = vpop.f32.mrb[29].mxu0 }
 0x300   : > { %v1704_v16 = vadd.f32 %v1686_v1, %v1599_v15 }
 0x301   : > { %v1729_v17 = vsel %vm1720_vm3, %v1705_v14, -inf }
 0x302   : > { %v1730_v19 = vmax.f32 %v1728_v0, %v1729_v17  ;;  %v1724_v20 = vsel %vm1720_vm3, %v1704_v16, -inf  ;;  %v3394_v21 = vpop.f32.mrb[30].mxu0 }
 0x303   : > { %v1725_v22 = vmax.f32 %v1723_v5, %v1724_v20  ;;  %v1707_v23 = vadd.f32 %v3394_v21, %v1686_v1  ;;  %v1609_v24 = vpop.f32.mrb[31].mxu0 }
 0x304   : > { %v1762_v26 = vsub.f32 %v1697_v52, %v1730_v19  ;;  %v1766_v27 = vsub.f32 %v1701_v55, %v1730_v19  ;;  %v1770_v28 = vsub.f32 %v1705_v14, %v1730_v19  ;;  %v1706_v29 = vadd.f32 %v1686_v1, %v1609_v24 }
 0x305   : > { %v1761_v30 = vsub.f32 %v1696_v53, %v1725_v22  ;;  %v1765_v31 = vsub.f32 %v1700_v57, %v1725_v22  ;;  %v1769_v32 = vsub.f32 %v1704_v16, %v1725_v22  ;;  %v1739_v33 = vsel %vm1720_vm3, %v1707_v23, -inf }
 0x306   : > { %v1787_v34 = vmul.f32 1.442695, %v1762_v26  ;;  %v1795_v35 = vmul.f32 1.442695, %v1766_v27  ;;  %v1803_v36 = vmul.f32 1.442695, %v1770_v28  ;;  %v1740_v37 = vmax.f32 %v1738_v61, %v1739_v33 }
 0x307   : > { %v1785_v38 = vmul.f32 1.442695, %v1761_v30  ;;  %v1793_v39 = vmul.f32 1.442695, %v1765_v31  ;;  %v3397_v43 = vpop.f32.mrb[32].mxu0  ;;  %v1734_v45 = vsel %vm1720_vm3, %v1706_v29, -inf }
 0x308   : > { %3598 = vpow2.f32 %v1787_v34  ;;  %v1764_v40 = vsub.f32 %v1699_v59, %v1740_v37  ;;  %v1768_v41 = vsub.f32 %v1703_v7, %v1740_v37  ;;  %v1772_v42 = vsub.f32 %v1707_v23, %v1740_v37  ;;  %v1619_v46 = vpop.f32.mrb[33].mxu0 }
 0x309   : > { %3600 = vpow2.f32 %v1795_v35  ;;  %v1801_v44 = vmul.f32 1.442695, %v1769_v32  ;;  %v1735_v50 = vmax.f32 %v1733_v13, %v1734_v45  ;;  %v1694_v55 = vsel %vm1691_vm6, -1e+09, %v3767_v47 }
 0x30a   : > { %3602 = vpow2.f32 %v1803_v36  ;;  %v1791_v48 = vmul.f32 1.442695, %v1764_v40  ;;  %v1799_v49 = vmul.f32 1.442695, %v1768_v41  ;;  %v3400_v52 = vpop.f32.mrb[34].mxu0  ;;  %v4116_v59 = vadd.f32 %v3397_v43, %v1693_v51 }
 0x30b   : > { %3604 = vpow2.f32 %v1785_v38  ;;  %v1807_v53 = vmul.f32 1.442695, %v1772_v42  ;;  %v1629_v54 = vpop.f32.mrb[35].mxu0  ;;  %v1763_v56 = vsub.f32 %v4087_v63, %v1735_v50  ;;  %v1767_v57 = vsub.f32 %v4090_v9, %v1735_v50 }
 0x30c   : > { %3606 = vpow2.f32 %v1793_v39  ;;  %v1771_v58 = vsub.f32 %v1706_v29, %v1735_v50  ;;  %v4118_v60 = vadd.f32 %v1693_v51, %v1619_v46  ;;  %v4123_v63 = vadd.f32 %v3400_v52, %v1693_v51 }
 0x30d   : > { %3608 = vpow2.f32 %v1801_v44  ;;  %v1789_v0 = vmul.f32 1.442695, %v1763_v56  ;;  %v1797_v2 = vmul.f32 1.442695, %v1767_v57  ;;  %v4125_v8 = vadd.f32 %v1693_v51, %v1629_v54 }
 0x30e   : > { %3610 = vpow2.f32 %v1791_v48  ;;  %v3403_v62 = vpop.f32.mrb[36].mxu0  ;;  %v1805_v3 = vmul.f32 1.442695, %v1771_v58  ;;  %v1746_v10 = vsel %vm1720_vm3, %v4116_v59, -inf  ;;  %v1741_v6 = vsel %vm1720_vm3, %v4118_v60, -inf }
 0x30f   : > { %3612 = vpow2.f32 %v1799_v49  ;;  %v4120_v5 = vadd.f32 %v3403_v62, %v1694_v55  ;;  %v1639_v7 = vpop.f32.mrb[37].mxu0  ;;  %v4155_v23 = vsel %vm1720_vm3, %v4123_v63, -inf  ;;  %v4159_v24 = vsel %vm1720_vm3, %v4125_v8, -inf }
 0x310   : > { %3614 = vpow2.f32 %v1807_v53  ;;  %v4127_v9 = vadd.f32 %v1694_v55, %v1639_v7  ;;  %v1695_v26 = vsel %vm1692_vm7, -1e+09, %v3767_v47 }
 0x311   : > { %3616 = vpow2.f32 %v1789_v0  ;;  %v1747_v11 = vsel %vm1720_vm3, %v4120_v5, -inf }
 0x312   : > { %v4129_v1 = vpop.eup %3598  ;;  %3618 = vpow2.f32 %v1797_v2  ;;  %v3406_v61 = vpop.f32.mrb[38].mxu0  ;;  %v1748_v13 = vmax.f32 %v1746_v10, %v1747_v11  ;;  %v1742_v14 = vsel %vm1720_vm3, %v4127_v9, -inf }
 0x313   : > { %v4137_v12 = vpop.eup %3600  ;;  %v1838_v4 = vsel %vm1720_vm3, %v4129_v1, 0.0  ;;  %3620 = vpow2.f32 %v1805_v3  ;;  %v1649_v15 = vpop.f32.mrb[39].mxu0  ;;  %v1743_v18 = vmax.f32 %v1741_v6, %v1742_v14  ;;  %v4147_v19 = vadd.f32 %v3406_v61, %v1694_v55 }
 0x314   : > { %v4143_v16 = vpop.eup %3602  ;;  %v1839_v17 = vsel %vm1720_vm3, %v4137_v12, 0.0  ;;  %v4149_v20 = vadd.f32 %v1694_v55, %v1649_v15 }
 0x315   : > { %v4151_v21 = vpop.eup %3604  ;;  %v1840_v22 = vadd.f32 %v1839_v17, %v1838_v4  ;;  %v1841_v28 = vsel %vm1720_vm3, %v4143_v16, 0.0  ;;  %v1757_v30 = vsel %vm1720_vm3, %v4147_v19, -inf }
 0x316   : > { %v4164_v27 = vpop.eup %3606  ;;  %v1833_v29 = vsel %vm1720_vm3, %v4151_v21, 0.0  ;;  %v1752_v31 = vsel %vm1720_vm3, %v4149_v20, -inf  ;;  %v3409_v32 = vpop.f32.mrb[40].mxu0  ;;  %v1758_v25 = vmax.f32 %v4155_v23, %v1757_v30 }
 0x317   : > { %v4174_v33 = vpop.eup %3608  ;;  %v1842_v34 = vadd.f32 %v1841_v28, %v1840_v22  ;;  %v1834_v47 = vsel %vm1720_vm3, %v4164_v27, 0.0  ;;  %v1753_v35 = vmax.f32 %v4159_v24, %v1752_v31  ;;  %v1659_v36 = vpop.f32.mrb[41].mxu0  ;;  %v1717_v39 = vadd.f32 %v3409_v32, %v1695_v26 }
 0x318   : > { %v4180_v37 = vpop.eup %3610  ;;  %v1835_v38 = vadd.f32 %v1834_v47, %v1833_v29  ;;  %v1716_v40 = vadd.f32 %v1695_v26, %v1659_v36  ;;  %v1836_v42 = vsel %vm1720_vm3, %v4174_v33, 0.0 }
 0x319   : > { %v4182_v41 = vpop.eup %3612  ;;  %3622 = vrcp.f32 %v1842_v34  ;;  %v1848_v43 = vsel %vm1720_vm3, %v4180_v37, 0.0  ;;  %v1749_v48 = vsel %vm1720_vm3, %v1717_v39, -inf }
 0x31a   : > { %v4188_v44 = vpop.eup %3614  ;;  %v4190_v45 = vadd.f32 %v1836_v42, %v1835_v38  ;;  %v1849_v46 = vsel %vm1720_vm3, %v4182_v41, 0.0  ;;  %v1744_v49 = vsel %vm1720_vm3, %v1716_v40, -inf  ;;  %v3412_v50 = vpop.f32.mrb[42].mxu0  ;;  %v1750_v54 = vmax.f32 %v1748_v13, %v1749_v48 }
 0x31b   : > { %v4196_v51 = vpop.eup %3616  ;;  %v1850_v52 = vadd.f32 %v1849_v46, %v1848_v43  ;;  %v1851_v53 = vsel %vm1720_vm3, %v4188_v44, 0.0  ;;  %v1745_v55 = vmax.f32 %v1743_v18, %v1744_v49  ;;  %v1669_v56 = vpop.f32.mrb[43].mxu0  ;;  %v1719_v62 = vadd.f32 %v3412_v50, %v1695_v26 }
 0x31c   : > { %v4200_v57 = vpop.eup %3618  ;;  %3624 = vrcp.f32 %v4190_v45  ;;  %v1843_v58 = vsel %vm1720_vm3, %v4196_v51, 0.0  ;;  %v1718_v0 = vadd.f32 %v1695_v26, %v1669_v56  ;;  %v1774_v10 = vsub.f32 %v4116_v59, %v1750_v54 }
 0x31d   : > { %v4205_v2 = vpop.eup %3620  ;;  %v1852_v3 = vadd.f32 %v1851_v53, %v1850_v52  ;;  %v1844_v7 = vsel %vm1720_vm3, %v4200_v57, 0.0  ;;  %v1778_v6 = vsub.f32 %v4120_v5, %v1750_v54  ;;  %v1782_v4 = vsub.f32 %v1717_v39, %v1750_v54 }
 0x31e   : > { %v1845_v11 = vadd.f32 %v1844_v7, %v1843_v58  ;;  %v1846_v61 = vsel %vm1720_vm3, %v4205_v2, 0.0  ;;  %v1773_v13 = vsub.f32 %v4118_v60, %v1745_v55  ;;  %v1811_v14 = vmul.f32 1.442695, %v1774_v10 }
 0x31f   : > { %3626 = vrcp.f32 %v1852_v3  ;;  %v1819_v15 = vmul.f32 1.442695, %v1778_v6  ;;  %v1777_v17 = vsub.f32 %v4127_v9, %v1745_v55  ;;  %v1827_v22 = vmul.f32 1.442695, %v1782_v4 }
 0x320   : > { %v1847_v18 = vadd.f32 %v1846_v61, %v1845_v11  ;;  %v1781_v23 = vsub.f32 %v1716_v40, %v1745_v55  ;;  %3628 = vpow2.f32 %v1811_v14  ;;  %v1809_v24 = vmul.f32 1.442695, %v1773_v13 }
 0x321   : > { %v1759_v59 = vsel %vm1720_vm3, %v1719_v62, -inf  ;;  %v1754_v5 = vsel %vm1720_vm3, %v1718_v0, -inf  ;;  %v1817_v26 = vmul.f32 1.442695, %v1777_v17 }
 0x322   : > { %3630 = vrcp.f32 %v1847_v18  ;;  %v1760_v28 = vmax.f32 %v1758_v25, %v1759_v59  ;;  %v1755_v29 = vmax.f32 %v1753_v35, %v1754_v5  ;;  %v1825_v60 = vmul.f32 1.442695, %v1781_v23 }
 0x323   : > { %v3623_v30 = vpop.eup %3622  ;;  %3632 = vpow2.f32 %v1819_v15 }
 0x324   : > { %v1882_v31 = vmul.f32 %v3623_v30, %v1842_v34  ;;  %3634 = vpow2.f32 %v1827_v22  ;;  %v1776_v9 = vsub.f32 %v4123_v63, %v1760_v28  ;;  %v1780_v32 = vsub.f32 %v4147_v19, %v1760_v28 }
 0x325   : > { %3636 = vpow2.f32 %v1809_v24  ;;  %v1784_v47 = vsub.f32 %v1719_v62, %v1760_v28  ;;  %v1775_v36 = vsub.f32 %v4125_v8, %v1755_v29  ;;  %v1779_v38 = vsub.f32 %v4149_v20, %v1755_v29 }
 0x326   : > { %v3625_v39 = vpop.eup %3624  ;;  %v1890_v40 = vsub.f32 2.0, %v1882_v31  ;;  %3638 = vpow2.f32 %v1817_v26  ;;  %v1815_v25 = vmul.f32 1.442695, %v1776_v9  ;;  %v1823_v35 = vmul.f32 1.442695, %v1780_v32 }
 0x327   : > { %3640 = vpow2.f32 %v1825_v60  ;;  %v1831_v42 = vmul.f32 1.442695, %v1784_v47  ;;  %v1783_v43 = vsub.f32 %v1718_v0, %v1755_v29  ;;  %v1813_v34 = vmul.f32 1.442695, %v1775_v36 }
 0x328   : > { %v1898_v46 = vmul.f32 %v3623_v30, %v1890_v40  ;;  %3642 = vpow2.f32 %v1815_v25  ;;  %v1821_v63 = vmul.f32 1.442695, %v1779_v38  ;;  %v1881_v19 = vmul.f32 %v3625_v39, %v4190_v45 }
 0x329   : > { %v3627_v48 = vpop.eup %3626  ;;  %3644 = vpow2.f32 %v1823_v35  ;;  %v1829_v49 = vmul.f32 1.442695, %v1783_v43 }
 0x32a   : > { %3646 = vpow2.f32 %v1831_v42  ;;  %v1889_v8 = vsub.f32 2.0, %v1881_v19  ;;  %v1906_v20 = vmul.f32 %v4129_v1, %v1898_v46  ;;  %v1884_v50 = vmul.f32 %v3627_v48, %v1852_v3  ;;  %v4223_v52 = vpop.eup %3628 }
 0x32b   : > { %3648 = vpow2.f32 %v1813_v34  ;;  %v1910_v53 = vmul.f32 %v4137_v12, %v1898_v46  ;;  %v4227_v54 = vmul.f32 %v4143_v16, %v1898_v46  ;;  %v1858_v45 = vsel %vm1720_vm3, %v4223_v52, 0.0 }
 0x32c   : > { %v3631_v55 = vpop.eup %3630  ;;  %3650 = vpow2.f32 %v1821_v63  ;;  %v1897_v56 = vmul.f32 %v3625_v39, %v1889_v8  ;;  %v1892_v58 = vsub.f32 2.0, %v1884_v50 }
 0x32d   : > { %v4231_v62 = vpop.eup %3632  ;;  %3652 = vpow2.f32 %v1829_v49  ;;  %v1883_v1 = vmul.f32 %v3631_v55, %v1847_v18 }
 0x32e   : > { %v4233_v0 = vpop.eup %3634  ;;  %v1859_v3 = vsel %vm1720_vm3, %v4231_v62, 0.0  ;;  %v1905_v12 = vmul.f32 %v4151_v21, %v1897_v56  ;;  %v1900_v16 = vmul.f32 %v3627_v48, %v1892_v58  ;;  %v1909_v7 = vmul.f32 %v4164_v27, %v1897_v56 }
 0x32f   : > { %v4239_v10 = vpop.eup %3636  ;;  %v1860_v6 = vadd.f32 %v1859_v3, %v1858_v45  ;;  %v1861_v11 = vsel %vm1720_vm3, %v4233_v0, 0.0  ;;  %v1891_v61 = vsub.f32 2.0, %v1883_v1  ;;  %v1913_v4 = vmul.f32 %v4174_v33, %v1897_v56 }
 0x330   : > { %v4244_v13 = vpop.eup %3638  ;;  %v1853_v14 = vsel %vm1720_vm3, %v4239_v10, 0.0  ;;  %3415 = vmatprep.mubr.msk.f32.mxu1 %vm1720_vm3, %v1905_v12  ;;  %v1908_v21 = vmul.f32 %v4180_v37, %v1900_v16  ;;  %v1912_v27 = vmul.f32 %v4182_v41, %v1900_v16  ;;  %v1916_v15 = vmul.f32 %v4188_v44, %v1900_v16 }
 0x331   : > { %v3641_v17 = vpop.eup %3640  ;;  %v1862_v18 = vadd.f32 %v1861_v11, %v1860_v6  ;;  %v1854_v22 = vsel %vm1720_vm3, %v4244_v13, 0.0  ;;  %3416 = vmatmul.mubr.msk.f32.vlgmr.msra.gmra.mrb[28].mxu1 %vm1720_vm3, %v1906_v20  ;;  %v1899_v33 = vmul.f32 %v3631_v55, %v1891_v61  ;;  %v3347_v6 = vpop.f32.mrb[4].mxu1 }
 0x332   : > { %v3643_v23 = vpop.eup %3642  ;;  %v1855_v24 = vadd.f32 %v1854_v22, %v1853_v14  ;;  %v1856_v59 = vsel %vm1720_vm3, %v3641_v17, 0.0  ;;  %v1218_v11 = vpop.f32.mrb[5].mxu1 }
 0x333   : > { %v3645_v5 = vpop.eup %3644  ;;  %3654 = vrcp.f32 %v1862_v18  ;;  %v1868_v37 = vsel %vm1720_vm3, %v3643_v23, 0.0  ;;  %v1907_v41 = vmul.f32 %v4196_v51, %v1899_v33  ;;  %v1911_v44 = vmul.f32 %v4200_v57, %v1899_v33 }
 0x334   : > { %v3647_v26 = vpop.eup %3646  ;;  %v1857_v28 = vadd.f32 %v1856_v59, %v1855_v24  ;;  %v1869_v29 = vsel %vm1720_vm3, %v3645_v5, 0.0  ;;  %v1915_v30 = vmul.f32 %v4205_v2, %v1899_v33 }
 0x335   : > { %v3649_v60 = vpop.eup %3648  ;;  %v1870_v31 = vadd.f32 %v1869_v29, %v1868_v37  ;;  %3418 = vmatprep.mubr.msk.f32.mxu1 %vm1720_vm3, %v1907_v41  ;;  %v1871_v32 = vsel %vm1720_vm3, %v3647_v26, 0.0 }
 0x336   : > { %v3651_v9 = vpop.eup %3650  ;;  %3656 = vrcp.f32 %v1857_v28  ;;  %v1863_v47 = vsel %vm1720_vm3, %v3649_v60, 0.0  ;;  %3419 = vmatmul.mubr.msk.f32.gmra.mrb[30].mxu1 %vm1720_vm3, %v1908_v21 }
 0x337   : > { %v3653_v51 = vpop.eup %3652  ;;  %v1872_v57 = vadd.f32 %v1871_v32, %v1870_v31  ;;  %v1864_v36 = vsel %vm1720_vm3, %v3651_v9, 0.0  ;;  %3421 = vmatprep.mubr.msk.f32.mxu1 %vm1720_vm3, %v1909_v7 }
 0x338   : > { %v1865_v38 = vadd.f32 %v1864_v36, %v1863_v47  ;;  %v1866_v2 = vsel %vm1720_vm3, %v3653_v51, 0.0 }
 0x339   : > { %3658 = vrcp.f32 %v1872_v57 }
 0x33a   : > { %v1867_v39 = vadd.f32 %v1866_v2, %v1865_v38  ;;  %3422 = vmatmul.mubr.msk.f32.gmra.mrb[32].mxu1 %vm1720_vm3, %v1910_v53 }
 0x33b   : > { %3424 = vmatprep.mubr.msk.f32.mxu1 %vm1720_vm3, %v1911_v44 }
 0x33c   : > { %3660 = vrcp.f32 %v1867_v39 }
 0x33d   : > { %v3655_v40 = vpop.eup %3654 }
 0x33e   : > { %3425 = vmatmul.mubr.msk.f32.gmra.mrb[34].mxu1 %vm1720_vm3, %v1912_v27  ;;  %v1886_v25 = vmul.f32 %v3655_v40, %v1862_v18 }
 0x33f   : > { %3427 = vmatprep.mubr.msk.f32.mxu1 %vm1720_vm3, %v1913_v4 }
 0x340   : > { %v3657_v35 = vpop.eup %3656  ;;  %v1894_v42 = vsub.f32 2.0, %v1886_v25 }
 0x341   : > { %v1885_v43 = vmul.f32 %v3657_v35, %v1857_v28 }
 0x342   : > { %3428 = vmatmul.mubr.msk.f32.gmra.mrb[36].mxu1 %vm1720_vm3, %v4227_v54  ;;  %v1902_v34 = vmul.f32 %v3655_v40, %v1894_v42 }
 0x343   : > { %v3659_v46 = vpop.eup %3658  ;;  %3430 = vmatprep.mubr.msk.f32.mxu1 %vm1720_vm3, %v1915_v30  ;;  %v1893_v63 = vsub.f32 2.0, %v1885_v43  ;;  %v3593_v30 = vld [vmem:[%s4654_s7 + $0x8] sm:$0xff]  }
 0x344   : > { %v1918_v19 = vmul.f32 %v4223_v52, %v1902_v34  ;;  %v1888_v48 = vmul.f32 %v3659_v46, %v1872_v57  ;;  %v1922_v49 = vmul.f32 %v4231_v62, %v1902_v34  ;;  %v1926_v8 = vmul.f32 %v4233_v0, %v1902_v34  ;;  %3453 = vmatprep.subr.bf16.mxu0 %v3593_v30 }
 0x345   : > { %v1901_v20 = vmul.f32 %v3657_v35, %v1893_v63  ;;  %3454 = vmatpush3.bf16.msra.mxu0 %v3593_v30 }
 0x346   : > { %v3661_v50 = vpop.eup %3660  ;;  %3431 = vmatmul.mubr.msk.f32.gmra.mrb[38].mxu1 %vm1720_vm3, %v1916_v15  ;;  %v1896_v53 = vsub.f32 2.0, %v1888_v48 }
 0x347   : > { %v1917_v55 = vmul.f32 %v4239_v10, %v1901_v20  ;;  %v1887_v54 = vmul.f32 %v3661_v50, %v1867_v39  ;;  %v1921_v45 = vmul.f32 %v4244_v13, %v1901_v20  ;;  %v1925_v56 = vmul.f32 %v3641_v17, %v1901_v20  ;;  %v3348_v10 = vpop.f32.mrb[6].mxu1 }
 0x348   : > { %v1904_v58 = vmul.f32 %v3659_v46, %v1896_v53  ;;  %v1221_v61 = vpop.f32.mrb[7].mxu1 }
 0x349   : > { %3433 = vmatprep.mubr.msk.f32.mxu1 %vm1720_vm3, %v1917_v55  ;;  %v1895_v52 = vsub.f32 2.0, %v1887_v54  ;;  %v3351_v4 = vpop.f32.mrb[8].mxu1 }
 0x34a   : > { %3434 = vmatmul.mubr.msk.f32.gmra.mrb[40].mxu1 %vm1720_vm3, %v1918_v19  ;;  %v1920_v62 = vmul.f32 %v3643_v23, %v1904_v58  ;;  %v1924_v1 = vmul.f32 %v3645_v5, %v1904_v58  ;;  %v1928_v0 = vmul.f32 %v3647_v26, %v1904_v58  ;;  %v1234_v13 = vpop.f32.mrb[9].mxu1 }
 0x34b   : > { %v1903_v3 = vmul.f32 %v3661_v50, %v1895_v52  ;;  %v3352_v14 = vpop.f32.mrb[10].mxu1 }
 0x34c   : > { %v1237_v21 = vpop.f32.mrb[11].mxu1 }
 0x34d   : > { %v1919_v12 = vmul.f32 %v3649_v60, %v1903_v3  ;;  %v1923_v16 = vmul.f32 %v3651_v9, %v1903_v3  ;;  %v1927_v7 = vmul.f32 %v3653_v51, %v1903_v3  ;;  %v4293_v27 = vpop.f32.mrb[12].mxu1  ;;  %v4325_v60 = vld [vmem:[%s4655_s8] ss:$0 sm:$0xff] }
 0x34e   : > { %v1250_v15 = vpop.f32.mrb[13].mxu1  ;;  %v1222_v31 = vadd.f32 %v4325_v60, %v1221_v61  ;;  %v1219_v9 = vadd.f32 %v4325_v60, %v1218_v11  ;;  %v1230_v36 = vadd.f32 %v3348_v10, %v4325_v60  ;;  %v1227_v38 = vadd.f32 %v3347_v6, %v4325_v60 }
 0x34f   : > { %3436 = vmatprep.mubr.msk.f32.mxu1 %vm1720_vm3, %v1919_v12  ;;  %v3356_v17 = vpop.f32.mrb[14].mxu1  ;;  %v1238_v35 = vadd.f32 %v4325_v60, %v1237_v21  ;;  %v1235_v42 = vadd.f32 %v4325_v60, %v1234_v13  ;;  %v1246_v19 = vadd.f32 %v3352_v14, %v4325_v60  ;;  %v1259_v14 = vadd.f32 %v4293_v27, %v4325_v60 }
 0x350   : > { %3437 = vmatmul.mubr.msk.f32.gmra.mrb[42].mxu1 %vm1720_vm3, %v1920_v62  ;;  %v1253_v18 = vpop.f32.mrb[15].mxu1 }
 0x351   : > { %3439 = vmatprep.mubr.msk.f32.mxu1 %vm1720_vm3, %v1921_v45  ;;  %v4295_v22 = vpop.f32.mrb[16].mxu1  ;;  %v1254_v52 = vadd.f32 %v4325_v60, %v1253_v18 }
 0x352   : > { %v4297_v33 = vpop.f32.mrb[17].mxu1 }
 0x353   : > { %v4299_v23 = vpop.f32.mrb[18].mxu1 }
 0x354   : > { %3440 = vmatmul.mubr.msk.f32.gmra.mrb[44].mxu1 %vm1720_vm3, %v1922_v49  ;;  %v4301_v24 = vpop.f32.mrb[19].mxu1 }
 0x355   : > { %3442 = vmatprep.mubr.msk.f32.mxu1 %vm1720_vm3, %v1923_v16  ;;  %v4303_v59 = vpop.f32.mrb[20].mxu1 }
 0x356   : > { %v4305_v5 = vpop.f32.mrb[21].mxu1 }
 0x357   : > { %v4307_v37 = vpop.f32.mrb[22].mxu1 }
 0x358   : > { %3443 = vmatmul.mubr.msk.f32.gmra.mrb[46].mxu1 %vm1720_vm3, %v1924_v1  ;;  %v4309_v41 = vpop.f32.mrb[23].mxu1 }
 0x359   : > { %3445 = vmatprep.mubr.msk.f32.mxu1 %vm1720_vm3, %v1925_v56  ;;  %v4311_v44 = vpop.f32.mrb[24].mxu1 }
 0x35a   : > { %v4313_v26 = vpop.f32.mrb[25].mxu1 }
 0x35b   : > { %v4315_v28 = vpop.f32.mrb[26].mxu1 }
 0x35c   : > { %3446 = vmatmul.mubr.msk.f32.gmra.mrb[48].mxu1 %vm1720_vm3, %v1926_v8  ;;  %v4317_v29 = vpop.f32.mrb[27].mxu1  ;;  %v1243_v8 = vadd.f32 %v3351_v4, %v4325_v60  ;;  %v1262_v4 = vadd.f32 %v3356_v17, %v4325_v60  ;;  %v1267_v17 = vadd.f32 %v4325_v60, %v4297_v33 }
 0x35d   : > { %3448 = vmatprep.mubr.msk.f32.mxu1 %vm1720_vm3, %v1927_v7 }
 0x360   : > { %3449 = vmatmul.mubr.msk.f32.gmra.mrb[50].mxu1 %vm1720_vm3, %v1928_v0  ;;  %v1251_v0 = vadd.f32 %v4325_v60, %v1250_v15 }
 0x404   : > { %v3417_v32 = vpop.f32.mrb[28].mxu1 }
 0x405   : > { %v2188_v47 = vmul.f32 %v3417_v32, %v1222_v31  ;;  %v2068_v51 = vpop.f32.mrb[29].mxu1 }
 0x406   : > { %v2187_v57 = vmul.f32 %v2068_v51, %v1219_v9 }
 0x407   : > { %v2216_v48 = vsel %vm901_vm0, %v2188_v47, 0.0  ;;  %v1270_v47 = vadd.f32 %v4325_v60, %v4301_v24  ;;  %v1278_v24 = vadd.f32 %v4299_v23, %v4325_v60  ;;  %v1294_v23 = vadd.f32 %v4307_v37, %v4325_v60 }
 0x408   : > { %v2211_v20 = vsel %vm901_vm0, %v2187_v57, 0.0  ;;  %v1302_v37 = vadd.f32 %v4325_v60, %v4317_v29  ;;  %v1310_v29 = vadd.f32 %v4315_v28, %v4325_v60 }
 0x409   : > { %v3420_v2 = vpop.f32.mrb[30].mxu1 }
 0x40a   : > { %v2190_v39 = vmul.f32 %v3420_v2, %v1230_v36  ;;  %v2078_v40 = vpop.f32.mrb[31].mxu1 }
 0x40b   : > { %v2189_v25 = vmul.f32 %v2078_v40, %v1227_v38 }
 0x40c   : > { %v2226_v62 = vsel %vm901_vm0, %v2190_v39, 0.0 }
 0x40d   : > { %v3423_v43 = vpop.f32.mrb[32].mxu1  ;;  %v2221_v3 = vsel %vm901_vm0, %v2189_v25, 0.0 }
 0x40e   : > { %v2192_v34 = vmul.f32 %v3423_v43, %v1238_v35  ;;  %v2088_v46 = vpop.f32.mrb[33].mxu1 }
 0x40f   : > { %v2191_v63 = vmul.f32 %v2088_v46, %v1235_v42  ;;  %v1275_v42 = vadd.f32 %v4295_v22, %v4325_v60 }
 0x410   : > { %v2217_v49 = vsel %vm901_vm0, %v2192_v34, 0.0 }
 0x411   : > { %v2218_v50 = vadd.f32 %v2217_v49, %v2216_v48  ;;  %v2212_v53 = vsel %vm901_vm0, %v2191_v63, 0.0  ;;  %v3426_v55 = vpop.f32.mrb[34].mxu1  ;;  %v1286_v63 = vadd.f32 %v4325_v60, %v4309_v41 }
 0x412   : > { %v2213_v54 = vadd.f32 %v2212_v53, %v2211_v20  ;;  %v2194_v45 = vmul.f32 %v3426_v55, %v1246_v19  ;;  %v2098_v56 = vpop.f32.mrb[35].mxu1  ;;  %v1283_v19 = vadd.f32 %v4325_v60, %v4305_v5  ;;  %v1291_v53 = vadd.f32 %v4303_v59, %v4325_v60 }
 0x413   : > { %v2193_v58 = vmul.f32 %v2098_v56, %v1243_v8  ;;  %v1299_v59 = vadd.f32 %v4325_v60, %v4313_v26 }
 0x414   : > { %v2227_v1 = vsel %vm901_vm0, %v2194_v45, 0.0 }
 0x415   : > { %v2228_v12 = vadd.f32 %v2227_v1, %v2226_v62  ;;  %v2222_v16 = vsel %vm901_vm0, %v2193_v58, 0.0  ;;  %v3429_v7 = vpop.f32.mrb[36].mxu1 }
 0x416   : > { %v2223_v6 = vadd.f32 %v2222_v16, %v2221_v3  ;;  %v2196_v11 = vmul.f32 %v3429_v7, %v1254_v52  ;;  %v2108_v10 = vpop.f32.mrb[37].mxu1 }
 0x417   : > { %v2195_v61 = vmul.f32 %v2108_v10, %v1251_v0 }
 0x418   : > { %v2219_v13 = vsel %vm901_vm0, %v2196_v11, 0.0 }
 0x419   : > { %v2220_v21 = vadd.f32 %v2219_v13, %v2218_v50  ;;  %v2214_v15 = vsel %vm901_vm0, %v2195_v61, 0.0  ;;  %v3432_v18 = vpop.f32.mrb[38].mxu1 }
 0x41a   : > { %v2215_v30 = vadd.f32 %v2214_v15, %v2213_v54  ;;  %v2198_v31 = vmul.f32 %v3432_v18, %v1262_v4  ;;  %v2118_v9 = vpop.f32.mrb[39].mxu1  ;;  %v1307_v4 = vadd.f32 %v4311_v44, %v4325_v60  ;;  %v3172_v44 = vld [vmem:[%s4655_s8 + $0x1] ss:$0 sm:$0xff] }
 0x41b   : > { %v2197_v32 = vmul.f32 %v2118_v9, %v1259_v14 }
 0x41c   : > { %v2259_v51 = vpack.c.bf16 %v2220_v21, %v2215_v30  ;;  %v2229_v57 = vsel %vm901_vm0, %v2198_v31, 0.0 }
 0x41d   : > { %v2230_v36 = vadd.f32 %v2229_v57, %v2228_v12  ;;  %v2224_v27 = vsel %vm901_vm0, %v2197_v32, 0.0  ;;  %v3435_v38 = vpop.f32.mrb[40].mxu1 }
 0x41e   : > { %v2225_v2 = vadd.f32 %v2224_v27, %v2223_v6  ;;  %v2200_v39 = vmul.f32 %v3435_v38, %v1270_v47  ;;  %v2128_v40 = vpop.f32.mrb[41].mxu1  ;;  %3455 = vmatprep.mubr.msk.bf16.mxu0 %vm901_vm0, %v2259_v51 }
 0x41f   : > { %v2199_v25 = vmul.f32 %v2128_v40, %v1267_v17  ;;  %v2251_v17 = vld [vmem:[%s4400_s17] sm:$0xff]  ;;  %v2253_v40 = vld [vmem:[%s4400_s17 + $0x10] sm:$0xff] }
 0x420   : > { %v2260_v35 = vpack.c.bf16 %v2230_v36, %v2225_v2  ;;  %v2236_v50 = vsel %vm901_vm0, %v2200_v39, 0.0  ;;  %v2252_v39 = vld [vmem:[%s4400_s17 + $0x8] sm:$0xff] }
 0x421   : > { %v2231_v55 = vsel %vm901_vm0, %v2199_v25, 0.0 }
 0x422   : > { %3456 = vmatmul.mubr.msk.bf16.vlgmr.msra.gmra.mrb[44].mxu0 %vm901_vm0, %v2260_v35 }
 0x423   : > { %v3438_v33 = vpop.f32.mrb[42].mxu1 }
 0x424   : > { %v2202_v43 = vmul.f32 %v3438_v33, %v1278_v24  ;;  %v2138_v34 = vpop.f32.mrb[43].mxu1 }
 0x425   : > { %v2201_v46 = vmul.f32 %v2138_v34, %v1275_v42  ;;  %v2254_v34 = vld [vmem:[%s4400_s17 + $0x18] sm:$0xff] }
 0x426   : > { %v2246_v62 = vsel %vm901_vm0, %v2202_v43, 0.0 }
 0x427   : > { %v3441_v48 = vpop.f32.mrb[44].mxu1  ;;  %v2241_v0 = vsel %vm901_vm0, %v2201_v46, 0.0 }
 0x428   : > { %v2204_v49 = vmul.f32 %v3441_v48, %v1286_v63  ;;  %v2148_v8 = vpop.f32.mrb[45].mxu1 }
 0x429   : > { %v2203_v20 = vmul.f32 %v2148_v8, %v1283_v19 }
 0x42a   : > { %v2237_v22 = vsel %vm901_vm0, %v2204_v49, 0.0 }
 0x42b   : > { %v2238_v41 = vadd.f32 %v2237_v22, %v2236_v50  ;;  %v2232_v54 = vsel %vm901_vm0, %v2203_v20, 0.0  ;;  %v3444_v5 = vpop.f32.mrb[46].mxu1  ;;  %v2255_v20 = vld [vmem:[%s4400_s17 + $0x20] sm:$0xff] }
 0x42c   : > { %v2233_v45 = vadd.f32 %v2232_v54, %v2231_v55  ;;  %v2206_v56 = vmul.f32 %v3444_v5, %v1294_v23  ;;  %v2158_v58 = vpop.f32.mrb[47].mxu1  ;;  %v2256_v55 = vld [vmem:[%s4400_s17 + $0x28] sm:$0xff] }
 0x42d   : > { %v2205_v52 = vmul.f32 %v2158_v58, %v1291_v53 }
 0x42e   : > { %v2247_v1 = vsel %vm901_vm0, %v2206_v56, 0.0  ;;  %v2258_v56 = vld [vmem:[%s4400_s17 + $0x38] sm:$0xff] }
 0x42f   : > { %v2248_v3 = vadd.f32 %v2247_v1, %v2246_v62  ;;  %v2242_v12 = vsel %vm901_vm0, %v2205_v52, 0.0  ;;  %v3447_v16 = vpop.f32.mrb[48].mxu1 }
 0x430   : > { %v2243_v7 = vadd.f32 %v2242_v12, %v2241_v0  ;;  %v2208_v6 = vmul.f32 %v3447_v16, %v1302_v37  ;;  %v2168_v11 = vpop.f32.mrb[49].mxu1 }
 0x431   : > { %v2207_v10 = vmul.f32 %v2168_v11, %v1299_v59 }
 0x432   : > { %v2239_v61 = vsel %vm901_vm0, %v2208_v6, 0.0 }
 0x433   : > { %v2240_v26 = vadd.f32 %v2239_v61, %v2238_v41  ;;  %v2234_v13 = vsel %vm901_vm0, %v2207_v10, 0.0  ;;  %v3450_v14 = vpop.f32.mrb[50].mxu1  ;;  %v2257_v41 = vld [vmem:[%s4400_s17 + $0x30] sm:$0xff]  ;;  %s3213_s17 = sshll.u32 (%p3883_p11), %s3750_s0, 4 }
 0x434   : > { %v2235_v21 = vadd.f32 %v2234_v13, %v2233_v45  ;;  %v2210_v15 = vmul.f32 %v3450_v14, %v1310_v29  ;;  %v2178_v18 = vpop.f32.mrb[51].mxu1  ;;  %s2870_s22 = sadd.s32 (%p3883_p11), %s3213_s17, %s3207_s15 }
 0x435   : > { %v2209_v30 = vmul.f32 %v2178_v18, %v1307_v4  ;;  %s3209_s14 = sshll.u32 (%p3883_p11), %s2870_s22, 3 }
 0x436   : > { %v2261_v31 = vpack.c.bf16 %v2240_v26, %v2235_v21  ;;  %v2249_v9 = vsel %vm901_vm0, %v2210_v15, 0.0  ;;  %s2872_s28 = scalar_lea.vmem (%p3883_p11), %s4658_s11, %s3209_s14 }
 0x437   : > { %v2250_v32 = vadd.f32 %v2249_v9, %v2248_v3  ;;  %v2244_v28 = vsel %vm901_vm0, %v2209_v30, 0.0  ;;  %v3594_v3 = vld [vmem:[%s4654_s7 + $0x10] sm:$0xff]  }
 0x438   : > { %v2245_v47 = vadd.f32 %v2244_v28, %v2243_v7  ;;  %3459 = vmatprep.mubr.msk.bf16.mxu0 %vm901_vm0, %v2261_v31  ;;  %3463 = vmatprep.subr.bf16.mxu1 %v3594_v3 }
 0x439   : > { %3464 = vmatpush3.bf16.msra.mxu1 %v3594_v3 }
 0x43a   : > { %v2262_v51 = vpack.c.bf16 %v2250_v32, %v2245_v47 }
 0x43c   : > { %3460 = vmatmul.mubr.msk.bf16.gmra.mrb[48].mxu0 %vm901_vm0, %v2262_v51 }
 0x4f5   : > { %v3457_v60 = vpop.f32.mrb[44].mxu0 }
 0x4f6   : > { %v2330_v57 = vpop.f32.mrb[45].mxu0  ;;  %v2339_v36 = vadd.f32 %v3457_v60, %v3172_v44 }
 0x4f7   : > { %v2331_v27 = vadd.f32 %v3172_v44, %v2330_v57  ;;  %v3458_v38 = vpop.f32.mrb[46].mxu0 }
 0x4f8   : > { %v2333_v2 = vpop.f32.mrb[47].mxu0  ;;  %v2342_v24 = vadd.f32 %v3458_v38, %v3172_v44  ;;  %v2363_v43 = vadd.f32 %v2339_v36, %v2253_v40 }
 0x4f9   : > { %v2334_v25 = vadd.f32 %v3172_v44, %v2333_v2  ;;  %v2361_v35 = vadd.f32 %v2331_v27, %v2251_v17 }
 0x4fa   : > { %v2377_v63 = vsel %vm901_vm0, %v2363_v43, 0.0  ;;  %v2364_v19 = vadd.f32 %v2342_v24, %v2254_v34 }
 0x4fb   : > { %v2371_v42 = vsel %vm901_vm0, %v2361_v35, 0.0  ;;  %v2362_v33 = vadd.f32 %v2334_v25, %v2252_v39 }
 0x4fc   : > { %2372 = vadd.xlane.f32.xlu0 %v2371_v42  ;;  %v2380_v48 = vsel %vm901_vm0, %v2364_v19, 0.0 }
 0x4fd   : > { %v2374_v46 = vsel %vm901_vm0, %v2362_v33, 0.0 }
 0x4fe   : > { %2375 = vadd.xlane.f32.xlu1 %v2374_v46 }
 0x500   : > { %2378 = vadd.xlane.f32.xlu0 %v2377_v63  ;;  %v3595_v63 = vld [vmem:[%s4654_s7 + $0x18] sm:$0xff]  }
 0x501   : > { %3465 = vmatprep.subr.bf16.mxu1 %v3595_v63 }
 0x502   : > { %3466 = vmatpush3.bf16.msra.mxu1 %v3595_v63  ;;  %v3597_v63 = vld [vmem:[%s4654_s7 + $0x28] sm:$0xff]  }
 0x504   : > { %2381 = vadd.xlane.f32.xlu0 %v2380_v48 }
 0x50f   : > { %v3461_v49 = vpop.f32.mrb[48].mxu0 }
 0x510   : > { %v2346_v8 = vpop.f32.mrb[49].mxu0  ;;  %v2355_v23 = vadd.f32 %v3461_v49, %v3172_v44 }
 0x511   : > { %v2347_v50 = vadd.f32 %v3172_v44, %v2346_v8  ;;  %v3462_v22 = vpop.f32.mrb[50].mxu0 }
 0x512   : > { %v2349_v53 = vpop.f32.mrb[51].mxu0  ;;  %v2358_v54 = vadd.f32 %v3462_v22, %v3172_v44  ;;  %v2367_v37 = vadd.f32 %v2355_v23, %v2257_v41 }
 0x513   : > { %v2350_v5 = vadd.f32 %v3172_v44, %v2349_v53  ;;  %v2365_v45 = vadd.f32 %v2347_v50, %v2255_v20 }
 0x514   : > { %v2368_v1 = vadd.f32 %v2358_v54, %v2258_v56  ;;  %v2389_v59 = vsel %vm901_vm0, %v2367_v37, 0.0 }
 0x515   : > { %v2383_v58 = vsel %vm901_vm0, %v2365_v45, 0.0  ;;  %v2366_v52 = vadd.f32 %v2350_v5, %v2256_v55 }
 0x516   : > { %2384 = vadd.xlane.f32.xlu1 %v2383_v58  ;;  %v2392_v0 = vsel %vm901_vm0, %v2368_v1, 0.0 }
 0x517   : > { %v2386_v62 = vsel %vm901_vm0, %v2366_v52, 0.0 }
 0x518   : > { %2387 = vadd.xlane.f32.xlu0 %v2386_v62 }
 0x51a   : > { %2390 = vadd.xlane.f32.xlu1 %v2389_v59 }
 0x51c   : > { %2393 = vadd.xlane.f32.xlu0 %v2392_v0 }
 0x589   : > { %v2373_v12 = vpop.xlane.xlu0 %2372 }
 0x58a   : > { %v2396_v16 = vmul.f32 0.03125, %v2373_v12 }
 0x58b   : > { %v2376_v7 = vpop.xlane.xlu1 %2375 }
 0x58c   : > { %v4421_v6 = vsub.f32 %v2361_v35, %v2396_v16  ;;  %v2397_v11 = vmul.f32 0.03125, %v2376_v7 }
 0x58d   : > { %v2379_v10 = vpop.xlane.xlu0 %2378 }
 0x58e   : > { %v4423_v29 = vsub.f32 %v2362_v33, %v2397_v11  ;;  %v2398_v61 = vmul.f32 0.03125, %v2379_v10  ;;  %v2412_v4 = vmul.f32 %v4421_v6, %v4421_v6 }
 0x590   : > { %v4427_v26 = vsub.f32 %v2363_v43, %v2398_v61  ;;  %v2420_v13 = vsel %vm901_vm0, %v2412_v4, 0.0  ;;  %v2413_v14 = vmul.f32 %v4423_v29, %v4423_v29 }
 0x591   : > { %v2382_v21 = vpop.xlane.xlu0 %2381  ;;  %2421 = vadd.xlane.f32.xlu1 %v2420_v13 }
 0x592   : > { %v2399_v15 = vmul.f32 0.03125, %v2382_v21  ;;  %v2423_v18 = vsel %vm901_vm0, %v2413_v14, 0.0  ;;  %v2414_v30 = vmul.f32 %v4427_v26, %v4427_v26 }
 0x593   : > { %2424 = vadd.xlane.f32.xlu0 %v2423_v18 }
 0x594   : > { %v4435_v31 = vsub.f32 %v2364_v19, %v2399_v15  ;;  %v2426_v9 = vsel %vm901_vm0, %v2414_v30, 0.0 }
 0x595   : > { %2427 = vadd.xlane.f32.xlu1 %v2426_v9 }
 0x596   : > { %v2415_v32 = vmul.f32 %v4435_v31, %v4435_v31 }
 0x598   : > { %v2429_v28 = vsel %vm901_vm0, %v2415_v32, 0.0 }
 0x599   : > { %2430 = vadd.xlane.f32.xlu0 %v2429_v28 }
 0x5a3   : > { %v2385_v47 = vpop.xlane.xlu1 %2384 }
 0x5a4   : > { %v2400_v51 = vmul.f32 0.03125, %v2385_v47 }
 0x5a5   : > { %v2388_v44 = vpop.xlane.xlu0 %2387 }
 0x5a6   : > { %v4441_v60 = vsub.f32 %v2365_v45, %v2400_v51  ;;  %v2401_v57 = vmul.f32 0.03125, %v2388_v44  ;;  %v3179_v45 = vld [vmem:[%s4655_s8 + $0x4] ss:$0 sm:$0xff] }
 0x5a7   : > { %v2391_v17 = vpop.xlane.xlu1 %2390 }
 0x5a8   : > { %v4443_v36 = vsub.f32 %v2366_v52, %v2401_v57  ;;  %v2402_v27 = vmul.f32 0.03125, %v2391_v17  ;;  %v2416_v38 = vmul.f32 %v4441_v60, %v4441_v60 }
 0x5a9   : > { %v2394_v2 = vpop.xlane.xlu0 %2393 }
 0x5aa   : > { %v4447_v39 = vsub.f32 %v2367_v37, %v2402_v27  ;;  %v2403_v40 = vmul.f32 0.03125, %v2394_v2  ;;  %v2432_v25 = vsel %vm901_vm0, %v2416_v38, 0.0  ;;  %v2417_v35 = vmul.f32 %v4443_v36, %v4443_v36 }
 0x5ab   : > { %2433 = vadd.xlane.f32.xlu1 %v2432_v25 }
 0x5ac   : > { %v4452_v24 = vsub.f32 %v2368_v1, %v2403_v40  ;;  %v2435_v42 = vsel %vm901_vm0, %v2417_v35, 0.0  ;;  %v2418_v33 = vmul.f32 %v4447_v39, %v4447_v39  ;;  %v3180_v1 = vld [vmem:[%s4655_s8 + $0x5] ss:$0 sm:$0xff] }
 0x5ad   : > { %2436 = vadd.xlane.f32.xlu0 %v2435_v42 }
 0x5ae   : > { %v2438_v43 = vsel %vm901_vm0, %v2418_v33, 0.0  ;;  %v2419_v34 = vmul.f32 %v4452_v24, %v4452_v24 }
 0x5af   : > { %2439 = vadd.xlane.f32.xlu1 %v2438_v43 }
 0x5b0   : > { %v2441_v46 = vsel %vm901_vm0, %v2419_v34, 0.0 }
 0x5b1   : > { %2442 = vadd.xlane.f32.xlu0 %v2441_v46 }
 0x61e   : > { %v2422_v19 = vpop.xlane.xlu1 %2421 }
 0x61f   : > { %v2444_v48 = vmul.f32 0.03125, %v2422_v19  ;;  %v3185_v19 = vld [vmem:[%s4655_s8 + $0x2] ss:$0 sm:$0xff] }
 0x620   : > { %v2425_v49 = vpop.xlane.xlu0 %2424 }
 0x621   : > { %v2452_v8 = vadd.f32 1e-05, %v2444_v48  ;;  %v2445_v20 = vmul.f32 0.03125, %v2425_v49 }
 0x622   : > { %v2428_v23 = vpop.xlane.xlu1 %2427 }
 0x623   : > { %3662 = vrsqrt.f32 %v2452_v8  ;;  %v2453_v50 = vadd.f32 1e-05, %v2445_v20  ;;  %v2446_v22 = vmul.f32 0.03125, %v2428_v23 }
 0x625   : > { %3664 = vrsqrt.f32 %v2453_v50  ;;  %v2454_v53 = vadd.f32 1e-05, %v2446_v22 }
 0x626   : > { %v2431_v55 = vpop.xlane.xlu0 %2430 }
 0x627   : > { %3666 = vrsqrt.f32 %v2454_v53  ;;  %v2447_v41 = vmul.f32 0.03125, %v2431_v55 }
 0x629   : > { %v2455_v54 = vadd.f32 1e-05, %v2447_v41 }
 0x62b   : > { %3668 = vrsqrt.f32 %v2455_v54 }
 0x62d   : > { %v3663_v5 = vpop.eup %3662 }
 0x62e   : > { %v2468_v56 = vmul.f32 %v3663_v5, %v4421_v6 }
 0x62f   : > { %v3665_v58 = vpop.eup %3664 }
 0x630   : > { %v2469_v52 = vmul.f32 %v3665_v58, %v4423_v29  ;;  %v2480_v37 = vmul.f32 %v3179_v45, %v2468_v56 }
 0x631   : > { %v3667_v62 = vpop.eup %3666 }
 0x632   : > { %v2470_v59 = vmul.f32 %v3667_v62, %v4427_v26  ;;  %v2481_v0 = vmul.f32 %v3179_v45, %v2469_v52  ;;  %v4473_v3 = vadd.f32 %v3180_v1, %v2480_v37 }
 0x634   : > { %v4475_v12 = vadd.f32 %v3180_v1, %v2481_v0  ;;  %v2482_v7 = vmul.f32 %v3179_v45, %v2470_v59 }
 0x635   : > { %v3669_v16 = vpop.eup %3668 }
 0x636   : > { %v2471_v6 = vmul.f32 %v3669_v16, %v4435_v31  ;;  %v2500_v11 = vpack.c.bf16 %v4475_v12, %v4473_v3  ;;  %v4481_v4 = vadd.f32 %v3180_v1, %v2482_v7 }
 0x638   : > { %v2483_v10 = vmul.f32 %v3179_v45, %v2471_v6  ;;  %v2434_v29 = vpop.xlane.xlu1 %2433  ;;  %3467 = vmatprep.mubr.msk.bf16.mxu1 %vm901_vm0, %v2500_v11 }
 0x639   : > { %v2448_v61 = vmul.f32 0.03125, %v2434_v29 }
 0x63a   : > { %v4483_v26 = vadd.f32 %v3180_v1, %v2483_v10  ;;  %v2437_v13 = vpop.xlane.xlu0 %2436 }
 0x63b   : > { %v2456_v14 = vadd.f32 1e-05, %v2448_v61  ;;  %v2449_v21 = vmul.f32 0.03125, %v2437_v13  ;;  %v3196_v13 = vld [vmem:[%s4655_s8 + $0x3] ss:$0 sm:$0xff] }
 0x63c   : > { %v2440_v15 = vpop.xlane.xlu1 %2439  ;;  %v2501_v18 = vpack.c.bf16 %v4483_v26, %v4481_v4 }
 0x63d   : > { %3670 = vrsqrt.f32 %v2456_v14  ;;  %v2457_v30 = vadd.f32 1e-05, %v2449_v21  ;;  %v2450_v31 = vmul.f32 0.03125, %v2440_v15 }
 0x63e   : > { %v2443_v9 = vpop.xlane.xlu0 %2442  ;;  %3468 = vmatmul.mubr.msk.bf16.vlgmr.msra.gmra.mrb[52].mxu1 %vm901_vm0, %v2501_v18 }
 0x63f   : > { %3672 = vrsqrt.f32 %v2457_v30  ;;  %v2458_v32 = vadd.f32 1e-05, %v2450_v31  ;;  %v2451_v28 = vmul.f32 0.03125, %v2443_v9 }
 0x641   : > { %3674 = vrsqrt.f32 %v2458_v32  ;;  %v2459_v47 = vadd.f32 1e-05, %v2451_v28 }
 0x643   : > { %3676 = vrsqrt.f32 %v2459_v47 }
 0x647   : > { %v3671_v51 = vpop.eup %3670 }
 0x648   : > { %v2472_v44 = vmul.f32 %v3671_v51, %v4441_v60 }
 0x649   : > { %v3673_v57 = vpop.eup %3672 }
 0x64a   : > { %v2473_v17 = vmul.f32 %v3673_v57, %v4443_v36  ;;  %v2484_v27 = vmul.f32 %v3179_v45, %v2472_v44 }
 0x64b   : > { %v3675_v38 = vpop.eup %3674 }
 0x64c   : > { %v2474_v2 = vmul.f32 %v3675_v38, %v4447_v39  ;;  %v2485_v40 = vmul.f32 %v3179_v45, %v2473_v17  ;;  %v4492_v42 = vadd.f32 %v3180_v1, %v2484_v27 }
 0x64d   : > { %v3677_v25 = vpop.eup %3676 }
 0x64e   : > { %v2475_v35 = vmul.f32 %v3677_v25, %v4452_v24  ;;  %v4494_v33 = vadd.f32 %v3180_v1, %v2485_v40  ;;  %v2486_v43 = vmul.f32 %v3179_v45, %v2474_v2  ;;  %v3596_v24 = vld [vmem:[%s4654_s7 + $0x20] sm:$0xff]  }
 0x64f   : > { %3475 = vmatprep.subr.bf16.mxu0 %v3596_v24 }
 0x650   : > { %v2502_v34 = vpack.c.bf16 %v4494_v33, %v4492_v42  ;;  %v2487_v60 = vmul.f32 %v3179_v45, %v2475_v35  ;;  %v4499_v36 = vadd.f32 %v3180_v1, %v2486_v43  ;;  %3476 = vmatpush3.bf16.msra.mxu0 %v3596_v24 }
 0x651   : > { %3477 = vmatprep.subr.bf16.mxu0 %v3597_v63 }
 0x652   : > { %3471 = vmatprep.mubr.msk.bf16.mxu1 %vm901_vm0, %v2502_v34  ;;  %v4501_v46 = vadd.f32 %v3180_v1, %v2487_v60 }
 0x654   : > { %v2503_v39 = vpack.c.bf16 %v4501_v46, %v4499_v36  ;;  %3478 = vmatpush3.bf16.msra.mxu0 %v3597_v63 }
 0x656   : > { %3472 = vmatmul.mubr.msk.bf16.gmra.mrb[56].mxu1 %vm901_vm0, %v2503_v39 }
 0x711   : > { %v3469_v48 = vpop.f32.mrb[52].mxu1 }
 0x712   : > { %v2581_v49 = vadd.f32 %v3469_v48, %v3185_v19  ;;  %v2572_v8 = vpop.f32.mrb[53].mxu1 }
 0x713   : > { %v2573_v20 = vadd.f32 %v3185_v19, %v2572_v8  ;;  %v3470_v23 = vpop.f32.mrb[54].mxu1 }
 0x714   : > { %v2584_v50 = vadd.f32 %v3470_v23, %v3185_v19  ;;  %v2575_v22 = vpop.f32.mrb[55].mxu1  ;;  %v2605_v55 = vmax.f32 %v2581_v49, 0.0 }
 0x715   : > { %v2576_v53 = vadd.f32 %v3185_v19, %v2575_v22  ;;  %v2603_v54 = vmax.f32 %v2573_v20, 0.0 }
 0x716   : > { %v2606_v41 = vmax.f32 %v2584_v50, 0.0 }
 0x717   : > { %v2604_v5 = vmax.f32 %v2576_v53, 0.0 }
 0x718   : > { %v2612_v45 = vpack.c.bf16 %v2606_v41, %v2605_v55 }
 0x719   : > { %v2611_v56 = vpack.c.bf16 %v2604_v5, %v2603_v54 }
 0x71b   : > { %3479 = vmatprep.mubr.msk.bf16.mxu0 %vm901_vm0, %v2611_v56 }
 0x71c   : > { %3480 = vmatmul.mubr.msk.bf16.vlgmr.msra.gmra.mrb[52].mxu0 %vm901_vm0, %v2612_v45 }
 0x729   : > { %v3473_v58 = vpop.f32.mrb[56].mxu1 }
 0x72a   : > { %v2597_v52 = vadd.f32 %v3473_v58, %v3185_v19  ;;  %v2588_v37 = vpop.f32.mrb[57].mxu1 }
 0x72b   : > { %v2589_v62 = vadd.f32 %v3185_v19, %v2588_v37  ;;  %v3474_v1 = vpop.f32.mrb[58].mxu1 }
 0x72c   : > { %v2600_v59 = vadd.f32 %v3474_v1, %v3185_v19  ;;  %v2591_v0 = vpop.f32.mrb[59].mxu1  ;;  %v2609_v7 = vmax.f32 %v2597_v52, 0.0 }
 0x72d   : > { %v2592_v16 = vadd.f32 %v3185_v19, %v2591_v0  ;;  %v2607_v11 = vmax.f32 %v2589_v62, 0.0 }
 0x72e   : > { %v2610_v6 = vmax.f32 %v2600_v59, 0.0 }
 0x72f   : > { %v2608_v10 = vmax.f32 %v2592_v16, 0.0 }
 0x730   : > { %v2614_v29 = vpack.c.bf16 %v2610_v6, %v2609_v7 }
 0x731   : > { %v2613_v61 = vpack.c.bf16 %v2608_v10, %v2607_v11 }
 0x733   : > { %3483 = vmatprep.mubr.msk.bf16.mxu0 %vm901_vm0, %v2613_v61 }
 0x734   : > { %3484 = vmatmul.mubr.msk.bf16.gmra.mrb[56].mxu0 %vm901_vm0, %v2614_v29 }
 0x7ef   : > { %v3481_v14 = vpop.f32.mrb[52].mxu0 }
 0x7f0   : > { %v2692_v21 = vadd.f32 %v3481_v14, %v3196_v13  ;;  %v2683_v15 = vpop.f32.mrb[53].mxu0 }
 0x7f1   : > { %v2684_v18 = vadd.f32 %v3196_v13, %v2683_v15  ;;  %v3482_v30 = vpop.f32.mrb[54].mxu0 }
 0x7f2   : > { %v2695_v31 = vadd.f32 %v3482_v30, %v3196_v13  ;;  %v2686_v9 = vpop.f32.mrb[55].mxu0  ;;  %v2716_v32 = vadd.f32 %v2692_v21, %v4481_v4 }
 0x7f3   : > { %v2687_v28 = vadd.f32 %v3196_v13, %v2686_v9  ;;  %v2714_v44 = vadd.f32 %v2684_v18, %v4473_v3 }
 0x7f4   : > { %v2730_v47 = vsel %vm901_vm0, %v2716_v32, 0.0  ;;  %v2717_v51 = vadd.f32 %v2695_v31, %v4483_v26 }
 0x7f5   : > { %2731 = vadd.xlane.f32.xlu1 %v2730_v47  ;;  %v2715_v17 = vadd.f32 %v2687_v28, %v4475_v12  ;;  %v2724_v27 = vsel %vm901_vm0, %v2714_v44, 0.0 }
 0x7f6   : > { %v2733_v57 = vsel %vm901_vm0, %v2717_v51, 0.0 }
 0x7f7   : > { %2734 = vadd.xlane.f32.xlu0 %v2733_v57  ;;  %v2727_v38 = vsel %vm901_vm0, %v2715_v17, 0.0 }
 0x7f9   : > { %2725 = vadd.xlane.f32.xlu1 %v2724_v27 }
 0x7fb   : > { %2728 = vadd.xlane.f32.xlu0 %v2727_v38 }
 0x807   : > { %v3485_v4 = vpop.f32.mrb[56].mxu0 }
 0x808   : > { %v2699_v2 = vpop.f32.mrb[57].mxu0  ;;  %v2708_v40 = vadd.f32 %v3485_v4, %v3196_v13 }
 0x809   : > { %v2700_v25 = vadd.f32 %v3196_v13, %v2699_v2  ;;  %v3486_v35 = vpop.f32.mrb[58].mxu0 }
 0x80a   : > { %v2702_v26 = vpop.f32.mrb[59].mxu0  ;;  %v2711_v43 = vadd.f32 %v3486_v35, %v3196_v13  ;;  %v2720_v39 = vadd.f32 %v2708_v40, %v4499_v36 }
 0x80b   : > { %v2703_v3 = vadd.f32 %v3196_v13, %v2702_v26  ;;  %v2718_v34 = vadd.f32 %v2700_v25, %v4492_v42  ;;  %v3203_v26 = vld [vmem:[%s4655_s8 + $0x6] ss:$0 sm:$0xff] }
 0x80c   : > { %v2721_v63 = vadd.f32 %v2711_v43, %v4501_v46  ;;  %v2742_v19 = vsel %vm901_vm0, %v2720_v39, 0.0 }
 0x80d   : > { %v2736_v60 = vsel %vm901_vm0, %v2718_v34, 0.0  ;;  %v2719_v12 = vadd.f32 %v2703_v3, %v4494_v33 }
 0x80e   : > { %2737 = vadd.xlane.f32.xlu1 %v2736_v60  ;;  %v2745_v48 = vsel %vm901_vm0, %v2721_v63, 0.0 }
 0x80f   : > { %v2739_v24 = vsel %vm901_vm0, %v2719_v12, 0.0 }
 0x810   : > { %2740 = vadd.xlane.f32.xlu0 %v2739_v24 }
 0x812   : > { %2743 = vadd.xlane.f32.xlu1 %v2742_v19 }
 0x814   : > { %2746 = vadd.xlane.f32.xlu0 %v2745_v48 }
 0x882   : > { %v2732_v49 = vpop.xlane.xlu1 %2731 }
 0x883   : > { %v2750_v42 = vmul.f32 0.03125, %v2732_v49 }
 0x884   : > { %v2735_v8 = vpop.xlane.xlu0 %2734 }
 0x885   : > { %v4538_v20 = vsub.f32 %v2716_v32, %v2750_v42  ;;  %v2751_v33 = vmul.f32 0.03125, %v2735_v8 }
 0x886   : > { %v2726_v23 = vpop.xlane.xlu1 %2725 }
 0x887   : > { %v4540_v36 = vsub.f32 %v2717_v51, %v2751_v33  ;;  %v2748_v50 = vmul.f32 0.03125, %v2726_v23  ;;  %v2766_v46 = vmul.f32 %v4538_v20, %v4538_v20 }
 0x888   : > { %v2729_v22 = vpop.xlane.xlu0 %2728 }
 0x889   : > { %v4544_v53 = vsub.f32 %v2714_v44, %v2748_v50  ;;  %v2749_v55 = vmul.f32 0.03125, %v2729_v22  ;;  %v2778_v41 = vsel %vm901_vm0, %v2766_v46, 0.0  ;;  %v2767_v54 = vmul.f32 %v4540_v36, %v4540_v36 }
 0x88a   : > { %2779 = vadd.xlane.f32.xlu1 %v2778_v41 }
 0x88b   : > { %v4549_v5 = vsub.f32 %v2715_v17, %v2749_v55  ;;  %v2781_v45 = vsel %vm901_vm0, %v2767_v54, 0.0  ;;  %v2764_v56 = vmul.f32 %v4544_v53, %v4544_v53 }
 0x88c   : > { %2782 = vadd.xlane.f32.xlu0 %v2781_v45 }
 0x88d   : > { %v2772_v58 = vsel %vm901_vm0, %v2764_v56, 0.0  ;;  %v2765_v52 = vmul.f32 %v4549_v5, %v4549_v5 }
 0x88e   : > { %2773 = vadd.xlane.f32.xlu1 %v2772_v58 }
 0x88f   : > { %v2775_v37 = vsel %vm901_vm0, %v2765_v52, 0.0 }
 0x890   : > { %2776 = vadd.xlane.f32.xlu0 %v2775_v37 }
 0x89b   : > { %v2738_v62 = vpop.xlane.xlu1 %2737 }
 0x89c   : > { %v2752_v1 = vmul.f32 0.03125, %v2738_v62 }
 0x89d   : > { %v2741_v59 = vpop.xlane.xlu0 %2740 }
 0x89e   : > { %v4558_v0 = vsub.f32 %v2718_v34, %v2752_v1  ;;  %v2753_v16 = vmul.f32 0.03125, %v2741_v59  ;;  %v3204_v34 = vld [vmem:[%s4655_s8 + $0x7] ss:$0 sm:$0xff] }
 0x89f   : > { %v2744_v7 = vpop.xlane.xlu1 %2743 }
 0x8a0   : > { %v4560_v6 = vsub.f32 %v2719_v12, %v2753_v16  ;;  %v2754_v11 = vmul.f32 0.03125, %v2744_v7  ;;  %v2768_v10 = vmul.f32 %v4558_v0, %v4558_v0 }
 0x8a1   : > { %v2747_v29 = vpop.xlane.xlu0 %2746 }
 0x8a2   : > { %v4564_v61 = vsub.f32 %v2720_v39, %v2754_v11  ;;  %v2755_v13 = vmul.f32 0.03125, %v2747_v29  ;;  %v2784_v14 = vsel %vm901_vm0, %v2768_v10, 0.0  ;;  %v2769_v21 = vmul.f32 %v4560_v6, %v4560_v6 }
 0x8a3   : > { %2785 = vadd.xlane.f32.xlu1 %v2784_v14 }
 0x8a4   : > { %v4569_v15 = vsub.f32 %v2721_v63, %v2755_v13  ;;  %v2787_v18 = vsel %vm901_vm0, %v2769_v21, 0.0  ;;  %v2770_v30 = vmul.f32 %v4564_v61, %v4564_v61 }
 0x8a5   : > { %2788 = vadd.xlane.f32.xlu0 %v2787_v18 }
 0x8a6   : > { %v2790_v31 = vsel %vm901_vm0, %v2770_v30, 0.0  ;;  %v2771_v9 = vmul.f32 %v4569_v15, %v4569_v15 }
 0x8a7   : > { %2791 = vadd.xlane.f32.xlu1 %v2790_v31 }
 0x8a8   : > { %v2793_v32 = vsel %vm901_vm0, %v2771_v9, 0.0 }
 0x8a9   : > { %2794 = vadd.xlane.f32.xlu0 %v2793_v32 }
 0x917   : > { %v2780_v28 = vpop.xlane.xlu1 %2779 }
 0x918   : > { %v2798_v47 = vmul.f32 0.03125, %v2780_v28 }
 0x919   : > { %v2783_v51 = vpop.xlane.xlu0 %2782 }
 0x91a   : > { %v2806_v44 = vadd.f32 1e-05, %v2798_v47  ;;  %v2799_v57 = vmul.f32 0.03125, %v2783_v51 }
 0x91b   : > { %v2774_v17 = vpop.xlane.xlu1 %2773 }
 0x91c   : > { %3678 = vrsqrt.f32 %v2806_v44  ;;  %v2807_v27 = vadd.f32 1e-05, %v2799_v57  ;;  %v2796_v38 = vmul.f32 0.03125, %v2774_v17 }
 0x91d   : > { %v2777_v4 = vpop.xlane.xlu0 %2776 }
 0x91e   : > { %3680 = vrsqrt.f32 %v2807_v27  ;;  %v2804_v2 = vadd.f32 1e-05, %v2796_v38  ;;  %v2797_v40 = vmul.f32 0.03125, %v2777_v4 }
 0x920   : > { %3682 = vrsqrt.f32 %v2804_v2  ;;  %v2805_v25 = vadd.f32 1e-05, %v2797_v40 }
 0x922   : > { %3684 = vrsqrt.f32 %v2805_v25 }
 0x926   : > { %v3679_v35 = vpop.eup %3678 }
 0x927   : > { %v2822_v43 = vmul.f32 %v3679_v35, %v4538_v20 }
 0x928   : > { %v3681_v3 = vpop.eup %3680 }
 0x929   : > { %v2834_v60 = vmul.f32 %v3203_v26, %v2822_v43  ;;  %v2823_v12 = vmul.f32 %v3681_v3, %v4540_v36 }
 0x92a   : > { %v3683_v39 = vpop.eup %3682 }
 0x92b   : > { %v2846_v24 = vadd.f32 %v3204_v34, %v2834_v60  ;;  %v2835_v63 = vmul.f32 %v3203_v26, %v2823_v12  ;;  %v2820_v19 = vmul.f32 %v3683_v39, %v4544_v53 }
 0x92c   : > { %v3685_v48 = vpop.eup %3684 }
 0x92d   : > { %2854 = vst.msk [vmem:[%s4588_s12 + $0x10] sm:$0xff] %vm901_vm0, %v2846_v24  ;;  %v2847_v49 = vadd.f32 %v3204_v34, %v2835_v63  ;;  %v2832_v42 = vmul.f32 %v3203_v26, %v2820_v19  ;;  %v2821_v8 = vmul.f32 %v3685_v48, %v4549_v5 }
 0x92f   : > { %2855 = vst.msk [vmem:[%s4588_s12 + $0x18] sm:$0xff] %vm901_vm0, %v2847_v49  ;;  %v2844_v20 = vadd.f32 %v3204_v34, %v2832_v42  ;;  %v2833_v33 = vmul.f32 %v3203_v26, %v2821_v8 }
 0x930   : > { %v2786_v23 = vpop.xlane.xlu1 %2785 }
 0x931   : > { %2852 = vst.msk [vmem:[%s4588_s12] sm:$0xff] %vm901_vm0, %v2844_v20  ;;  %v2845_v36 = vadd.f32 %v3204_v34, %v2833_v33  ;;  %v2800_v50 = vmul.f32 0.03125, %v2786_v23 }
 0x932   : > { %v2789_v46 = vpop.xlane.xlu0 %2788 }
 0x933   : > { %2853 = vst.msk [vmem:[%s4588_s12 + $0x8] sm:$0xff] %vm901_vm0, %v2845_v36  ;;  %v2808_v22 = vadd.f32 1e-05, %v2800_v50  ;;  %v2801_v53 = vmul.f32 0.03125, %v2789_v46 }
 0x934   : > { %v2792_v55 = vpop.xlane.xlu1 %2791 }
 0x935   : > { %3686 = vrsqrt.f32 %v2808_v22  ;;  %v2809_v41 = vadd.f32 1e-05, %v2801_v53  ;;  %v2802_v54 = vmul.f32 0.03125, %v2792_v55 }
 0x936   : > { %v2795_v45 = vpop.xlane.xlu0 %2794  ;;  %v2920_v31 = vld [vmem:[%s4588_s12 + $0x18] sm:$0xff] (%p3883_p11) }
 0x937   : > { %3688 = vrsqrt.f32 %v2809_v41  ;;  %v2810_v5 = vadd.f32 1e-05, %v2802_v54  ;;  %v2803_v56 = vmul.f32 0.03125, %v2795_v45  ;;  %2921 = vst [vmem:[%s2872_s28 + $0x18] sm:$0xff] (%p3883_p11), %v2920_v31 }
 0x939   : > { %3690 = vrsqrt.f32 %v2810_v5  ;;  %v2811_v58 = vadd.f32 1e-05, %v2803_v56 }
 0x93b   : > { %3692 = vrsqrt.f32 %v2811_v58 }
 0x93f   : > { %v3687_v52 = vpop.eup %3686 }
 0x940   : > { %v2824_v37 = vmul.f32 %v3687_v52, %v4558_v0 }
 0x941   : > { %v3689_v62 = vpop.eup %3688 }
 0x942   : > { %v2836_v1 = vmul.f32 %v3203_v26, %v2824_v37  ;;  %v2825_v59 = vmul.f32 %v3689_v62, %v4560_v6  ;;  %v2914_v6 = vld [vmem:[%s4588_s12] sm:$0xff] (%p3883_p11) }
 0x943   : > { %v3691_v16 = vpop.eup %3690  ;;  %2915 = vst [vmem:[%s2872_s28] sm:$0xff] (%p3883_p11), %v2914_v6 }
 0x944   : > { %v2848_v7 = vadd.f32 %v3204_v34, %v2836_v1  ;;  %v2837_v11 = vmul.f32 %v3203_v26, %v2825_v59  ;;  %v2826_v10 = vmul.f32 %v3691_v16, %v4564_v61  ;;  %v2916_v61 = vld [vmem:[%s4588_s12 + $0x8] sm:$0xff] (%p3883_p11) }
 0x945   : > { %v3693_v29 = vpop.eup %3692  ;;  %2917 = vst [vmem:[%s2872_s28 + $0x8] sm:$0xff] (%p3883_p11), %v2916_v61 }
 0x946   : > { %2856 = vst.msk [vmem:[%s4588_s12 + $0x20] sm:$0xff] %vm901_vm0, %v2848_v7  ;;  %v2849_v13 = vadd.f32 %v3204_v34, %v2837_v11  ;;  %v2838_v14 = vmul.f32 %v3203_v26, %v2826_v10  ;;  %v2827_v21 = vmul.f32 %v3693_v29, %v4569_v15  ;;  %2866 = sbr.rel (!%p3883_p11) target bundleno = 2389 (0x955), region = 184  ;;  %v2918_v15 = vld [vmem:[%s4588_s12 + $0x10] sm:$0xff] (%p3883_p11) }
 0x947   : > { %2919 = vst [vmem:[%s2872_s28 + $0x10] sm:$0xff] (%p3883_p11), %v2918_v15 }
 0x948   : > { %2857 = vst.msk [vmem:[%s4588_s12 + $0x28] sm:$0xff] %vm901_vm0, %v2849_v13  ;;  %v2850_v0 = vadd.f32 %v3204_v34, %v2838_v14  ;;  %v2839_v18 = vmul.f32 %v3203_v26, %v2827_v21 }
 0x94a   : > { %2858 = vst.msk [vmem:[%s4588_s12 + $0x30] sm:$0xff] %vm901_vm0, %v2850_v0  ;;  %v2851_v30 = vadd.f32 %v3204_v34, %v2839_v18 }
 0x94c   : > { %2859 = vst.msk [vmem:[%s4588_s12 + $0x38] sm:$0xff] %vm901_vm0, %v2851_v30 }
 0x94d   : > { %v2922_v9 = vld [vmem:[%s4588_s12 + $0x20] sm:$0xff] }
 0x94e   : > { %2923 = vst [vmem:[%s2872_s28 + $0x40] sm:$0xff] %v2922_v9 }
 0x94f   : > { %v2924_v32 = vld [vmem:[%s4588_s12 + $0x28] sm:$0xff] }
 0x950   : > { %2925 = vst [vmem:[%s2872_s28 + $0x48] sm:$0xff] %v2924_v32 }
 0x951   : > { %v2926_v28 = vld [vmem:[%s4588_s12 + $0x30] sm:$0xff] }
 0x952   : > { %2927 = vst [vmem:[%s2872_s28 + $0x50] sm:$0xff] %v2926_v28 }
 0x953   : > { %v2928_v47 = vld [vmem:[%s4588_s12 + $0x38] sm:$0xff] }
 0x954   : > { %2929 = vst [vmem:[%s2872_s28 + $0x58] sm:$0xff] %v2928_v47 }
 0x955 PF: > { %s27_s27 = sadd.s32 1, %s3762_s27   ;;  %s4665_s19 = sld [smem:[#allocation9_spill]] }
 0x956   : > { %p24_p3 = scmp.ge.s32.totalorder %s27_s27, 6   ;;  %s4666_s20 = sld [smem:[#allocation10_spill]] }
 0x957   : > { %s4667_s22 = smov %s3742_s23  ;;  %s4668_s23 = smov %s3891_s18 }
 0x958   : > { %s4669_s24 = smov %s3754_s25  ;;  %s4670_s0 = smov %s3758_s26 }
 0x959   :  { %26 = sbr.rel (!%p24_p3) target bundleno = 19 (0x13), region = 271 }
 0x95b   : > { %s4671_s25 = smov %s4665_s19 }
 0x95c   : > { %s4672_s26 = smov %s4666_s20 }

</bundles_post_ra>
